<compile_context>
chip_gen: v7x
topology: tpu7x:2x2x1
jax: 0.10.0
libtpu: 0.0.40
codegen_flags: <defaults>
</compile_context>

<pallas_src>
import functools

import jax
import jax.numpy as jnp
import numpy as np
from jax.experimental import pallas as pl
from jax.experimental.pallas import tpu as pltpu

_BOTTLENECK_EXPANSION = 4
_BN_EPS = 1e-5
_LANES = 128


def _round_up(x, m):
    return (x + m - 1) // m * m


def _pick_row_tile(Ho, Wp):
    """Smallest divisor of Ho with TR*Wp >= 512 (fills a 256-wide MXU with
    headroom on v6e/v7x) while keeping the per-step working set bounded."""
    for tr in range(1, Ho + 1):
        if Ho % tr == 0 and tr * Wp >= 512:
            return tr
    return Ho
    # TODO(synk): per-generation TR (v7x: re-derive against 64 MiB VMEM and tile
    # Co for 2048-channel blocks; v5e: keep TR modest, it is HBM/VALU bound).


def _shift_w(x, dw):
    """y[:, j, :] = x[:, j + dw, :] when 0 <= j + dw < W, else 0 ('same' pad)."""
    if dw == 0:
        return x
    t, w, c = x.shape
    zeros = jnp.zeros((t, abs(dw), c), x.dtype)
    if dw > 0:
        return jnp.concatenate([x[:, dw:, :], zeros], axis=1)
    return jnp.concatenate([zeros, x[:, :w + dw, :]], axis=1)
    # TODO(synk): move this column shift onto the XLU via pltpu.roll + a
    # wrap-around mask (frees VALU slots; biggest win on v5e).


# -----------------------------------------------------------------------------
# Fused bottleneck kernel: one program = one (batch, row-tile) output block.
# x lives in HBM; its TRh-row window is fetched by a manual, double-buffered DMA.
# -----------------------------------------------------------------------------
def _bottleneck_kernel(*refs, TR, Wp, Wo, Ho, d, downsample):
    if downsample:
        (x_hbm, w1_ref, b1_ref, w2_ref, b2_ref, w3_ref, b3_ref,
         wd_ref, bd_ref, o_ref, xwin, sem) = refs
    else:
        (x_hbm, w1_ref, b1_ref, w2_ref, b2_ref, w3_ref, b3_ref,
         o_ref, xwin, sem) = refs
        wd_ref = bd_ref = None

    Cin = xwin.shape[3]
    Cm = w1_ref.shape[1]
    Co = w3_ref.shape[1]
    TRh = TR + 2 * d                                    # rows incl. conv2 halo

    n = pl.program_id(0)
    r = pl.program_id(1)
    N = pl.num_programs(0)
    R = pl.num_programs(1)
    step = n * R + r
    slot = step % 2

    # ---- manual cross-step double-buffered row-window DMA (x stays in HBM) --
    def x_copy(nn, rr, sl):
        return pltpu.make_async_copy(
            x_hbm.at[nn, pl.ds(rr * TR, TRh)], xwin.at[sl], sem.at[sl])

    @pl.when(step == 0)
    def _prime():
        x_copy(n, r, slot).start()

    x_copy(n, r, slot).wait()                           # window for this step

    @pl.when(step + 1 < N * R)
    def _prefetch_next():
        nxt_r = jnp.where(r + 1 < R, r + 1, 0)
        nxt_n = jnp.where(r + 1 < R, n, n + 1)
        x_copy(nxt_n, nxt_r, 1 - slot).start()

    xw = xwin[slot]                                     # (TRh, Wp, Cin) bf16

    # ---- conv1 (1x1) + folded-BN bias + ReLU over the haloed row window -----
    h1 = jnp.dot(xw.reshape(TRh * Wp, Cin), w1_ref[...],
                 preferred_element_type=jnp.float32)
    h1 = jnp.maximum(h1 + b1_ref[...], 0.0).reshape(TRh, Wp, Cm)

    # Halo rows / padded width columns outside the image must be zero (conv2
    # zero-pads).  Single bf16 cast before the 3x3 loop.
    r0 = r * TR
    row = jax.lax.broadcasted_iota(jnp.int32, (TRh, 1, 1), 0) + (r0 - d)
    valid = (row >= 0) & (row < Ho)
    if Wp != Wo:
        col = jax.lax.broadcasted_iota(jnp.int32, (1, Wp, 1), 1)
        valid = valid & (col < Wo)
    h1 = jnp.where(valid, h1, 0.0).astype(jnp.bfloat16)  # (TRh, Wp, Cm)

    # ---- conv2 (3x3, dilation d) + folded-BN bias + ReLU: 9 MXU matmuls -----
    acc = jnp.zeros((TR * Wp, Cm), jnp.float32)
    for kw in range(3):
        shifted = _shift_w(h1, (kw - 1) * d)             # bf16 column shift
        for kh in range(3):
            tap = shifted[kh * d:kh * d + TR]            # (TR, Wp, Cm)
            acc = acc + jnp.dot(tap.reshape(TR * Wp, Cm), w2_ref[kh, kw],
                                preferred_element_type=jnp.float32)
    h2 = jnp.maximum(acc + b2_ref[...], 0.0).astype(jnp.bfloat16)

    # ---- conv3 (1x1) + folded-BN bias + ReLU --------------------------------
    # TODO(synk): for Co >= 1024 tile the output channels here (and in the
    # store) so h3/res f32 temporaries stay small on v7x.
    h3 = jnp.dot(h2, w3_ref[...], preferred_element_type=jnp.float32)
    h3 = jnp.maximum(h3 + b3_ref[...], 0.0)              # (TR*Wp, Co) f32

    # ---- residual branch, add, final ReLU; single lane-dense bf16 store -----
    xc = xw[d:d + TR].reshape(TR * Wp, Cin)
    if downsample:
        # projection shortcut: 1x1 conv + BN + ReLU (this module has the ReLU)
        res = jnp.dot(xc, wd_ref[...], preferred_element_type=jnp.float32)
        res = jnp.maximum(res + bd_ref[...], 0.0)
    else:
        # identity shortcut (in_ch == out_ch, stride == 1)
        res = xc.astype(jnp.float32)
    o_ref[...] = jnp.maximum(h3 + res, 0.0).astype(o_ref.dtype
                                                   ).reshape(1, TR, Wp, Co)


# -----------------------------------------------------------------------------
# Wrapper: NCHW in / NCHW out (PyTorch interface); NHWC + lane padding inside.
# -----------------------------------------------------------------------------
def bottleneck_forward(x_nchw, prep, *, out_ch, stride, dilation, downsample,
                       row_tile=None):
    N, Cin, _, _ = x_nchw.shape
    d = dilation
    Cin_p, Cm = prep["w1"].shape
    Co = prep["w3"].shape[1]

    # NCHW -> NHWC once at the boundary (channels -> lanes). Stride on a 1x1
    # conv == input subsampling (MSRA-style stride-on-conv1, as in the module).
    x = jnp.transpose(x_nchw, (0, 2, 3, 1))
    if stride > 1:
        x = x[:, ::stride, ::stride, :]
    Ho, Wo = x.shape[1], x.shape[2]
    if not downsample:
        assert Cin == out_ch and stride == 1 and Cin_p == Co

    Wp = _round_up(Wo, 8)                          # sublane-aligned width
    # Zero halo rows (so every row-window DMA is in-bounds), width pad, channel
    # pad, bf16 cast -- all fused by XLA when this wrapper is jitted.
    x = jnp.pad(x, ((0, 0), (d, d), (0, Wp - Wo), (0, Cin_p - Cin)))
    x = x.astype(jnp.bfloat16)
    # TODO(synk): drop the d-row zero pad (extra HBM pass over x) by clamping
    # the DMA window start in-kernel and masking out-of-image taps.
    Hp = Ho + 2 * d

    TR = row_tile if (row_tile and Ho % row_tile == 0) else _pick_row_tile(Ho, Wp)
    TRh = TR + 2 * d
    grid = (N, Ho // TR)

    in_specs = [
        pl.BlockSpec(memory_space=pl.ANY),         # x: raw HBM ref, manual DMA
        pl.BlockSpec((Cin_p, Cm), lambda n, r: (0, 0)),
        pl.BlockSpec((1, Cm), lambda n, r: (0, 0)),
        pl.BlockSpec((3, 3, Cm, Cm), lambda n, r: (0, 0, 0, 0)),
        pl.BlockSpec((1, Cm), lambda n, r: (0, 0)),
        pl.BlockSpec((Cm, Co), lambda n, r: (0, 0)),
        pl.BlockSpec((1, Co), lambda n, r: (0, 0)),
    ]
    # TODO(synk): single-buffer these constant-index weight/bias blocks
    # (pipeline_mode=pl.Buffered(1)) to halve their VMEM footprint on v7x.
    args = [x, prep["w1"], prep["b1"], prep["w2"], prep["b2"],
            prep["w3"], prep["b3"]]
    if downsample:
        in_specs += [pl.BlockSpec((Cin_p, Co), lambda n, r: (0, 0)),
                     pl.BlockSpec((1, Co), lambda n, r: (0, 0))]
        args += [prep["wd"], prep["bd"]]

    flops = 2 * N * (Ho // TR) * (
        TRh * Wp * Cin_p * Cm                      # conv1 (incl. halo recompute)
        + 9 * TR * Wp * Cm * Cm                    # conv2 (3x3 dilated)
        + TR * Wp * Cm * Co                        # conv3
        + (TR * Wp * Cin_p * Co if downsample else 0))
    weight_bytes = sum(int(v.size) * v.dtype.itemsize for v in prep.values())
    bytes_accessed = int(x.size) * 2 + N * Ho * Wp * Co * 2 + weight_bytes
    cost = pl.CostEstimate(flops=int(flops), transcendentals=0,
                           bytes_accessed=int(bytes_accessed))

    out = pl.pallas_call(
        functools.partial(_bottleneck_kernel, TR=TR, Wp=Wp, Wo=Wo, Ho=Ho, d=d,
                          downsample=downsample),
        out_shape=jax.ShapeDtypeStruct((N, Ho, Wp, Co), jnp.bfloat16),
        grid=grid,
        in_specs=in_specs,
        out_specs=pl.BlockSpec((1, TR, Wp, Co), lambda n, r: (n, r, 0, 0)),
        scratch_shapes=[pltpu.VMEM((2, TRh, Wp, Cin_p), jnp.bfloat16),
                        pltpu.SemaphoreType.DMA((2,))],
        compiler_params=pltpu.CompilerParams(
            # "arbitrary": the cross-step x-window prefetch assumes sequential
            # grid execution on one core (megacore sharding would break it).
            dimension_semantics=("arbitrary", "arbitrary"),
            vmem_limit_bytes=48 * 1024 * 1024),
        cost_estimate=cost,
    )(*args)

    out = out[:, :, :Wo, :out_ch]                  # drop width / channel padding
    return jnp.transpose(out, (0, 3, 1, 2))        # back to NCHW (bf16)


# -----------------------------------------------------------------------------
# Parameters (deterministic synthetic) + Pallas-side preparation
# -----------------------------------------------------------------------------
def _fold_bn(gamma, beta, mean, var):
    scale = gamma / jnp.sqrt(var + _BN_EPS)
    bias = beta - mean * scale
    return scale, bias


def init_params(key, in_ch, out_ch, downsample):
    """Raw PyTorch-layout (OIHW) conv weights + folded BN vectors, all f32."""
    mid = out_ch // _BOTTLENECK_EXPANSION
    ks = jax.random.split(key, 8)

    def bn_params(k, c):
        k1, k2, k3, k4 = jax.random.split(k, 4)
        gamma = 1.0 + 0.1 * jax.random.normal(k1, (c,), jnp.float32)
        beta = 0.1 * jax.random.normal(k2, (c,), jnp.float32)
        mean = 0.1 * jax.random.normal(k3, (c,), jnp.float32)
        var = jax.random.uniform(k4, (c,), jnp.float32, 0.5, 1.5)
        return _fold_bn(gamma, beta, mean, var)

    p = {}
    p["w1"] = 0.1 * jax.random.normal(ks[0], (mid, in_ch, 1, 1), jnp.float32)
    p["w2"] = 0.1 * jax.random.normal(ks[1], (mid, mid, 3, 3), jnp.float32)
    p["w3"] = 0.1 * jax.random.normal(ks[2], (out_ch, mid, 1, 1), jnp.float32)
    p["s1v"], p["b1v"] = bn_params(ks[3], mid)
    p["s2v"], p["b2v"] = bn_params(ks[4], mid)
    p["s3v"], p["b3v"] = bn_params(ks[5], out_ch)
    if downsample:
        p["wd"] = 0.1 * jax.random.normal(ks[6], (out_ch, in_ch, 1, 1), jnp.float32)
        p["sdv"], p["bdv"] = bn_params(ks[7], out_ch)
    return p


def prepare_params(p, *, downsample):
    """Fold BN scale into weights, pad channels to 128-lane multiples, cast bf16."""
    mid, in_ch = p["w1"].shape[0], p["w1"].shape[1]
    out_ch = p["w3"].shape[0]
    Cm = _round_up(mid, _LANES)
    Co = _round_up(out_ch, _LANES)
    # identity residual shares the output padding; projection pads in_ch to lanes
    Cin_p = _round_up(in_ch, _LANES) if downsample else Co

    def pad2(a, rows, cols):
        return jnp.pad(a, ((0, rows - a.shape[0]), (0, cols - a.shape[1])))

    def padv(v, c):
        return jnp.pad(v, (0, c - v.shape[0]))[None, :].astype(jnp.float32)

    w1 = p["w1"][:, :, 0, 0].T * p["s1v"][None, :]                             # (in, mid)
    w2 = jnp.transpose(p["w2"], (2, 3, 1, 0)) * p["s2v"][None, None, None, :]  # HWIO
    w3 = p["w3"][:, :, 0, 0].T * p["s3v"][None, :]                             # (mid, out)

    prep = {}
    prep["w1"] = pad2(w1, Cin_p, Cm).astype(jnp.bfloat16)
    prep["b1"] = padv(p["b1v"], Cm)
    prep["w2"] = jnp.pad(w2, ((0, 0), (0, 0), (0, Cm - mid), (0, Cm - mid))
                         ).astype(jnp.bfloat16)
    prep["b2"] = padv(p["b2v"], Cm)
    prep["w3"] = pad2(w3, Cm, Co).astype(jnp.bfloat16)
    prep["b3"] = padv(p["b3v"], Co)
    if downsample:
        wd = p["wd"][:, :, 0, 0].T * p["sdv"][None, :]                         # (in, out)
        prep["wd"] = pad2(wd, Cin_p, Co).astype(jnp.bfloat16)
        prep["bd"] = padv(p["bdv"], Co)
    return prep


# -----------------------------------------------------------------------------
# Pure-JAX f32 reference (lax.conv), matching the PyTorch module semantics
# -----------------------------------------------------------------------------
def bottleneck_reference(x, p, *, stride, dilation, downsample):
    def conv(xx, w, s=1, pad=0, dil=1):
        return jax.lax.conv_general_dilated(
            xx, w, (s, s), [(pad, pad), (pad, pad)],
            rhs_dilation=(dil, dil),
            dimension_numbers=("NCHW", "OIHW", "NCHW"))

    def bn(xx, sc, bi):
        return xx * sc[None, :, None, None] + bi[None, :, None, None]

    h = jax.nn.relu(bn(conv(x, p["w1"], s=stride), p["s1v"], p["b1v"]))
    h = jax.nn.relu(bn(conv(h, p["w2"], pad=dilation, dil=dilation),
                       p["s2v"], p["b2v"]))
    h = jax.nn.relu(bn(conv(h, p["w3"]), p["s3v"], p["b3v"]))
    if downsample:
        r = jax.nn.relu(bn(conv(x, p["wd"], s=stride), p["sdv"], p["bdv"]))
    else:
        r = x
    return jax.nn.relu(h + r)


def _check(name, key, *, n, in_ch, out_ch, hw, stride, dilation, downsample):
    kx, kp = jax.random.split(key)
    x = jax.random.normal(kx, (n, in_ch, hw, hw), jnp.float32)
    p = init_params(kp, in_ch, out_ch, downsample)
    prep = prepare_params(p, downsample=downsample)

    fwd = jax.jit(functools.partial(
        bottleneck_forward, out_ch=out_ch, stride=stride, dilation=dilation,
        downsample=downsample))
    out = jax.block_until_ready(fwd(x, prep))
    ref = jax.block_until_ready(
        bottleneck_reference(x, p, stride=stride, dilation=dilation,
                             downsample=downsample))

    assert out.shape == ref.shape, (name, out.shape, ref.shape)
    # bf16 operands / bf16 output vs the f32 reference -> loose tolerance.
    np.testing.assert_allclose(np.asarray(out, dtype=np.float32),
                               np.asarray(ref), rtol=2.5e-2, atol=2.5e-2,
                               err_msg=name)


if __name__ == "__main__":
    key = jax.random.PRNGKey(0)
    k1, k2, k3, k4 = jax.random.split(key, 4)
    # Dilated-stage usage: projection shortcut, dilation=2.
    _check("downsample_dil2", k1, n=2, in_ch=16, out_ch=32, hw=16,
           stride=1, dilation=2, downsample=True)
    # Identity-shortcut usage: in_ch == out_ch, stride=1, dilation=1.
    _check("identity", k2, n=2, in_ch=32, out_ch=32, hw=16,
           stride=1, dilation=1, downsample=False)
    # Non-multiple-of-8 spatial size (exercises width padding + column mask).
    _check("odd_width", k3, n=1, in_ch=16, out_ch=32, hw=10,
           stride=1, dilation=1, downsample=True)
    # Strided projection shortcut (stride on conv1 == input subsampling).
    _check("stride2", k4, n=1, in_ch=16, out_ch=32, hw=16,
           stride=2, dilation=1, downsample=True)
    print("KERNEL_OK")
</pallas_src>

<mosaic_0001>
module attributes {stable_mosaic.version = 11 : i64} {
  func.func @_bottleneck_kernel(%arg0: i32, %arg1: i32, %arg2: memref<2x20x16x128xbf16, #tpu.memory_space<any>>, %arg3: memref<128x128xbf16, #tpu.memory_space<vmem>>, %arg4: memref<1x128xf32, #tpu.memory_space<vmem>>, %arg5: memref<3x3x128x128xbf16, #tpu.memory_space<vmem>>, %arg6: memref<1x128xf32, #tpu.memory_space<vmem>>, %arg7: memref<128x128xbf16, #tpu.memory_space<vmem>>, %arg8: memref<1x128xf32, #tpu.memory_space<vmem>>, %arg9: memref<128x128xbf16, #tpu.memory_space<vmem>>, %arg10: memref<1x128xf32, #tpu.memory_space<vmem>>, %arg11: memref<1x16x16x128xbf16, #tpu.memory_space<vmem>>, %arg12: memref<2x20x16x128xbf16, #tpu.memory_space<vmem>>, %arg13: memref<2x!tpu.dma_semaphore, #tpu.memory_space<semaphore_mem>>) attributes {dimension_semantics = [#tpu.dimension_semantics<arbitrary>, #tpu.dimension_semantics<arbitrary>], iteration_bounds = array<i64: 2, 1>, scalar_prefetch = 0 : i64, scratch_operands = 2 : i64, tpu.core_type = #tpu.core_type<tc>, window_params = [{}, {pipeline_mode = #tpu.pipeline_mode<synchronous>, transform_indices = @transform_1, window_bounds = array<i64: 128, 128>}, {pipeline_mode = #tpu.pipeline_mode<synchronous>, transform_indices = @transform_2, window_bounds = array<i64: 1, 128>}, {pipeline_mode = #tpu.pipeline_mode<synchronous>, transform_indices = @transform_3, window_bounds = array<i64: 3, 3, 128, 128>}, {pipeline_mode = #tpu.pipeline_mode<synchronous>, transform_indices = @transform_4, window_bounds = array<i64: 1, 128>}, {pipeline_mode = #tpu.pipeline_mode<synchronous>, transform_indices = @transform_5, window_bounds = array<i64: 128, 128>}, {pipeline_mode = #tpu.pipeline_mode<synchronous>, transform_indices = @transform_6, window_bounds = array<i64: 1, 128>}, {pipeline_mode = #tpu.pipeline_mode<synchronous>, transform_indices = @transform_7, window_bounds = array<i64: 128, 128>}, {pipeline_mode = #tpu.pipeline_mode<synchronous>, transform_indices = @transform_8, window_bounds = array<i64: 1, 128>}, {transform_indices = @transform_9, window_bounds = array<i64: 1, 16, 16, 128>}]} {
    %c1_i32 = arith.constant 1 : i32
    %0 = arith.muli %arg0, %c1_i32 : i32
    %1 = arith.addi %0, %arg1 : i32
    %c2_i32 = arith.constant 2 : i32
    %c0_i32 = arith.constant 0 : i32
    %2 = arith.cmpi eq, %c2_i32, %c0_i32 : i32
    %c1_i32_0 = arith.constant 1 : i32
    %3 = arith.select %2, %c1_i32_0, %c2_i32 : i32
    %4 = arith.remsi %1, %3 : i32
    %c0_i32_1 = arith.constant 0 : i32
    %5 = arith.cmpi ne, %4, %c0_i32_1 : i32
    %c0_i32_2 = arith.constant 0 : i32
    %6 = arith.cmpi slt, %4, %c0_i32_2 : i32
    %c0_i32_3 = arith.constant 0 : i32
    %7 = arith.cmpi slt, %3, %c0_i32_3 : i32
    %8 = arith.xori %6, %7 : i1
    %9 = arith.andi %8, %5 : i1
    %10 = arith.addi %4, %3 : i32
    %11 = arith.select %9, %10, %4 : i32
    %c0_i32_4 = arith.constant 0 : i32
    %12 = arith.cmpi eq, %1, %c0_i32_4 : i32
    %13 = arith.extui %12 : i1 to i32
    %c0_i32_5 = arith.constant 0 : i32
    %14 = arith.cmpi ne, %13, %c0_i32_5 : i32
    scf.if %14 {
      %c16_i32_92 = arith.constant 16 : i32
      %142 = arith.muli %arg1, %c16_i32_92 : i32
      %c0_i32_93 = arith.constant 0 : i32
      %c0_i32_94 = arith.constant 0 : i32
      %143 = tpu.memref_slice %arg2[%arg0, %142, %c0_i32_93, %c0_i32_94] : memref<2x20x16x128xbf16, #tpu.memory_space<any>> -> memref<1x20x16x128xbf16, #tpu.memory_space<any>>
      %144 = tpu.memref_squeeze %143 : memref<1x20x16x128xbf16, #tpu.memory_space<any>> -> memref<20x16x128xbf16, #tpu.memory_space<any>>
      %c0_i32_95 = arith.constant 0 : i32
      %c0_i32_96 = arith.constant 0 : i32
      %c0_i32_97 = arith.constant 0 : i32
      %145 = tpu.memref_slice %arg12[%11, %c0_i32_95, %c0_i32_96, %c0_i32_97] : memref<2x20x16x128xbf16, #tpu.memory_space<vmem>> -> memref<1x20x16x128xbf16, #tpu.memory_space<vmem>>
      %146 = tpu.memref_squeeze %145 : memref<1x20x16x128xbf16, #tpu.memory_space<vmem>> -> memref<20x16x128xbf16, #tpu.memory_space<vmem>>
      %147 = tpu.memref_slice %arg13[%11] : memref<2x!tpu.dma_semaphore, #tpu.memory_space<semaphore_mem>> -> memref<1x!tpu.dma_semaphore, #tpu.memory_space<semaphore_mem>>
      %148 = tpu.memref_squeeze %147 : memref<1x!tpu.dma_semaphore, #tpu.memory_space<semaphore_mem>> -> memref<!tpu.dma_semaphore, #tpu.memory_space<semaphore_mem>>
      tpu.enqueue_dma source(%144 : memref<20x16x128xbf16, #tpu.memory_space<any>>) target(%146 : memref<20x16x128xbf16, #tpu.memory_space<vmem>>) target_semaphore(%148 : memref<!tpu.dma_semaphore, #tpu.memory_space<semaphore_mem>>)
    } else {
    }
    %c16_i32 = arith.constant 16 : i32
    %15 = arith.muli %arg1, %c16_i32 : i32
    %c0_i32_6 = arith.constant 0 : i32
    %c0_i32_7 = arith.constant 0 : i32
    %16 = tpu.memref_slice %arg2[%arg0, %15, %c0_i32_6, %c0_i32_7] : memref<2x20x16x128xbf16, #tpu.memory_space<any>> -> memref<1x20x16x128xbf16, #tpu.memory_space<any>>
    %17 = tpu.memref_squeeze %16 : memref<1x20x16x128xbf16, #tpu.memory_space<any>> -> memref<20x16x128xbf16, #tpu.memory_space<any>>
    %c0_i32_8 = arith.constant 0 : i32
    %c0_i32_9 = arith.constant 0 : i32
    %c0_i32_10 = arith.constant 0 : i32
    %18 = tpu.memref_slice %arg12[%11, %c0_i32_8, %c0_i32_9, %c0_i32_10] : memref<2x20x16x128xbf16, #tpu.memory_space<vmem>> -> memref<1x20x16x128xbf16, #tpu.memory_space<vmem>>
    %19 = tpu.memref_squeeze %18 : memref<1x20x16x128xbf16, #tpu.memory_space<vmem>> -> memref<20x16x128xbf16, #tpu.memory_space<vmem>>
    %20 = tpu.memref_slice %arg13[%11] : memref<2x!tpu.dma_semaphore, #tpu.memory_space<semaphore_mem>> -> memref<1x!tpu.dma_semaphore, #tpu.memory_space<semaphore_mem>>
    %21 = tpu.memref_squeeze %20 : memref<1x!tpu.dma_semaphore, #tpu.memory_space<semaphore_mem>> -> memref<!tpu.dma_semaphore, #tpu.memory_space<semaphore_mem>>
    tpu.wait_dma2 semaphore(%21 : memref<!tpu.dma_semaphore, #tpu.memory_space<semaphore_mem>>) src(%17 : memref<20x16x128xbf16, #tpu.memory_space<any>>) dst(%19 : memref<20x16x128xbf16, #tpu.memory_space<vmem>>)
    %c1_i32_11 = arith.constant 1 : i32
    %22 = arith.addi %1, %c1_i32_11 : i32
    %c2_i32_12 = arith.constant 2 : i32
    %23 = arith.cmpi slt, %22, %c2_i32_12 : i32
    %24 = arith.extui %23 : i1 to i32
    %c0_i32_13 = arith.constant 0 : i32
    %25 = arith.cmpi ne, %24, %c0_i32_13 : i32
    scf.if %25 {
      %c1_i32_92 = arith.constant 1 : i32
      %142 = arith.addi %arg1, %c1_i32_92 : i32
      %c1_i32_93 = arith.constant 1 : i32
      %143 = arith.cmpi slt, %142, %c1_i32_93 : i32
      %c1_i32_94 = arith.constant 1 : i32
      %144 = arith.addi %arg1, %c1_i32_94 : i32
      %c0_i32_95 = arith.constant 0 : i32
      %145 = arith.select %143, %144, %c0_i32_95 : i32
      %c1_i32_96 = arith.constant 1 : i32
      %146 = arith.addi %arg1, %c1_i32_96 : i32
      %c1_i32_97 = arith.constant 1 : i32
      %147 = arith.cmpi slt, %146, %c1_i32_97 : i32
      %c1_i32_98 = arith.constant 1 : i32
      %148 = arith.addi %arg0, %c1_i32_98 : i32
      %149 = arith.select %147, %arg0, %148 : i32
      %c1_i32_99 = arith.constant 1 : i32
      %150 = arith.subi %c1_i32_99, %11 : i32
      %c16_i32_100 = arith.constant 16 : i32
      %151 = arith.muli %145, %c16_i32_100 : i32
      %c0_i32_101 = arith.constant 0 : i32
      %c0_i32_102 = arith.constant 0 : i32
      %152 = tpu.memref_slice %arg2[%149, %151, %c0_i32_101, %c0_i32_102] : memref<2x20x16x128xbf16, #tpu.memory_space<any>> -> memref<1x20x16x128xbf16, #tpu.memory_space<any>>
      %153 = tpu.memref_squeeze %152 : memref<1x20x16x128xbf16, #tpu.memory_space<any>> -> memref<20x16x128xbf16, #tpu.memory_space<any>>
      %c0_i32_103 = arith.constant 0 : i32
      %c0_i32_104 = arith.constant 0 : i32
      %c0_i32_105 = arith.constant 0 : i32
      %154 = tpu.memref_slice %arg12[%150, %c0_i32_103, %c0_i32_104, %c0_i32_105] : memref<2x20x16x128xbf16, #tpu.memory_space<vmem>> -> memref<1x20x16x128xbf16, #tpu.memory_space<vmem>>
      %155 = tpu.memref_squeeze %154 : memref<1x20x16x128xbf16, #tpu.memory_space<vmem>> -> memref<20x16x128xbf16, #tpu.memory_space<vmem>>
      %156 = tpu.memref_slice %arg13[%150] : memref<2x!tpu.dma_semaphore, #tpu.memory_space<semaphore_mem>> -> memref<1x!tpu.dma_semaphore, #tpu.memory_space<semaphore_mem>>
      %157 = tpu.memref_squeeze %156 : memref<1x!tpu.dma_semaphore, #tpu.memory_space<semaphore_mem>> -> memref<!tpu.dma_semaphore, #tpu.memory_space<semaphore_mem>>
      tpu.enqueue_dma source(%153 : memref<20x16x128xbf16, #tpu.memory_space<any>>) target(%155 : memref<20x16x128xbf16, #tpu.memory_space<vmem>>) target_semaphore(%157 : memref<!tpu.dma_semaphore, #tpu.memory_space<semaphore_mem>>)
    } else {
    }
    %26 = arith.index_cast %11 : i32 to index
    %c0 = arith.constant 0 : index
    %c0_14 = arith.constant 0 : index
    %c0_15 = arith.constant 0 : index
    %27 = vector.load %arg12[%26, %c0, %c0_14, %c0_15] : memref<2x20x16x128xbf16, #tpu.memory_space<vmem>>, vector<1x20x16x128xbf16>
    %28 = vector.shape_cast %27 : vector<1x20x16x128xbf16> to vector<20x16x128xbf16>
    %29 = vector.shape_cast %28 : vector<20x16x128xbf16> to vector<320x128xbf16>
    %c0_16 = arith.constant 0 : index
    %c0_17 = arith.constant 0 : index
    %30 = vector.load %arg3[%c0_16, %c0_17] : memref<128x128xbf16, #tpu.memory_space<vmem>>, vector<128x128xbf16>
    %cst = arith.constant dense<0.000000e+00> : vector<320x128xf32>
    %31 = tpu.matmul %29, %30, %cst {dimension_numbers = #tpu.dot_dimension_numbers<[1], [0], [0], [1], [0, 0, 1, 1], [], []>} : vector<320x128xbf16>, vector<128x128xbf16>, vector<320x128xf32> -> vector<320x128xf32>
    %c0_18 = arith.constant 0 : index
    %c0_19 = arith.constant 0 : index
    %32 = vector.load %arg4[%c0_18, %c0_19] : memref<1x128xf32, #tpu.memory_space<vmem>>, vector<1x128xf32>
    %33 = vector.broadcast %32 : vector<1x128xf32> to vector<320x128xf32>
    %34 = arith.addf %31, %33 : vector<320x128xf32>
    %cst_20 = arith.constant 0.000000e+00 : f32
    %35 = vector.broadcast %cst_20 : f32 to vector<320x128xf32>
    %36 = arith.maximumf %34, %35 : vector<320x128xf32>
    %37 = vector.shape_cast %36 : vector<320x128xf32> to vector<20x16x128xf32>
    %c16_i32_21 = arith.constant 16 : i32
    %38 = arith.muli %arg1, %c16_i32_21 : i32
    %39 = tpu.iota {dimensions = array<i32: 0>} : vector<20x1x1xi32>
    %c2_i32_22 = arith.constant 2 : i32
    %40 = arith.subi %38, %c2_i32_22 : i32
    %41 = vector.broadcast %40 : i32 to vector<20x1x1xi32>
    %42 = arith.addi %39, %41 : vector<20x1x1xi32>
    %c0_i32_23 = arith.constant 0 : i32
    %43 = vector.broadcast %c0_i32_23 : i32 to vector<20x1x1xi32>
    %44 = arith.cmpi sge, %42, %43 : vector<20x1x1xi32>
    %c16_i32_24 = arith.constant 16 : i32
    %45 = vector.broadcast %c16_i32_24 : i32 to vector<20x1x1xi32>
    %46 = arith.cmpi slt, %42, %45 : vector<20x1x1xi32>
    %47 = arith.andi %44, %46 : vector<20x1x1xi1>
    %cst_25 = arith.constant 0.000000e+00 : f32
    %48 = vector.shape_cast %47 : vector<20x1x1xi1> to vector<20x1x1xi1>
    %49 = vector.broadcast %48 : vector<20x1x1xi1> to vector<20x16x128xi1>
    %50 = vector.broadcast %cst_25 : f32 to vector<20x16x128xf32>
    %51 = arith.select %49, %37, %50 : vector<20x16x128xi1>, vector<20x16x128xf32>
    %52 = arith.truncf %51 : vector<20x16x128xf32> to vector<20x16x128xbf16>
    %cst_26 = arith.constant 0.000000e+00 : f32
    %53 = vector.broadcast %cst_26 : f32 to vector<256x128xf32>
    %cst_27 = arith.constant 0.000000e+00 : bf16
    %54 = vector.broadcast %cst_27 : bf16 to vector<20x2x128xbf16>
    %55 = vector.extract_strided_slice %52 {offsets = [0, 0, 0], sizes = [20, 14, 128], strides = [1, 1, 1]} : vector<20x16x128xbf16> to vector<20x14x128xbf16>
    %56 = tpu.concatenate %54, %55 in 1 : vector<20x2x128xbf16>, vector<20x14x128xbf16> -> vector<20x16x128xbf16>
    %57 = vector.extract_strided_slice %56 {offsets = [0, 0, 0], sizes = [16, 16, 128], strides = [1, 1, 1]} : vector<20x16x128xbf16> to vector<16x16x128xbf16>
    %58 = vector.shape_cast %57 : vector<16x16x128xbf16> to vector<256x128xbf16>
    %c0_28 = arith.constant 0 : index
    %c0_29 = arith.constant 0 : index
    %c0_30 = arith.constant 0 : index
    %c0_31 = arith.constant 0 : index
    %59 = vector.load %arg5[%c0_28, %c0_29, %c0_30, %c0_31] : memref<3x3x128x128xbf16, #tpu.memory_space<vmem>>, vector<1x1x128x128xbf16>
    %60 = vector.shape_cast %59 : vector<1x1x128x128xbf16> to vector<128x128xbf16>
    %cst_32 = arith.constant dense<0.000000e+00> : vector<256x128xf32>
    %61 = tpu.matmul %58, %60, %cst_32 {dimension_numbers = #tpu.dot_dimension_numbers<[1], [0], [0], [1], [0, 0, 1, 1], [], []>} : vector<256x128xbf16>, vector<128x128xbf16>, vector<256x128xf32> -> vector<256x128xf32>
    %62 = arith.addf %53, %61 : vector<256x128xf32>
    %63 = vector.extract_strided_slice %56 {offsets = [2, 0, 0], sizes = [16, 16, 128], strides = [1, 1, 1]} : vector<20x16x128xbf16> to vector<16x16x128xbf16>
    %64 = vector.shape_cast %63 : vector<16x16x128xbf16> to vector<256x128xbf16>
    %c1 = arith.constant 1 : index
    %c0_33 = arith.constant 0 : index
    %c0_34 = arith.constant 0 : index
    %c0_35 = arith.constant 0 : index
    %65 = vector.load %arg5[%c1, %c0_33, %c0_34, %c0_35] : memref<3x3x128x128xbf16, #tpu.memory_space<vmem>>, vector<1x1x128x128xbf16>
    %66 = vector.shape_cast %65 : vector<1x1x128x128xbf16> to vector<128x128xbf16>
    %cst_36 = arith.constant dense<0.000000e+00> : vector<256x128xf32>
    %67 = tpu.matmul %64, %66, %cst_36 {dimension_numbers = #tpu.dot_dimension_numbers<[1], [0], [0], [1], [0, 0, 1, 1], [], []>} : vector<256x128xbf16>, vector<128x128xbf16>, vector<256x128xf32> -> vector<256x128xf32>
    %68 = arith.addf %62, %67 : vector<256x128xf32>
    %69 = vector.extract_strided_slice %56 {offsets = [4, 0, 0], sizes = [16, 16, 128], strides = [1, 1, 1]} : vector<20x16x128xbf16> to vector<16x16x128xbf16>
    %70 = vector.shape_cast %69 : vector<16x16x128xbf16> to vector<256x128xbf16>
    %c2 = arith.constant 2 : index
    %c0_37 = arith.constant 0 : index
    %c0_38 = arith.constant 0 : index
    %c0_39 = arith.constant 0 : index
    %71 = vector.load %arg5[%c2, %c0_37, %c0_38, %c0_39] : memref<3x3x128x128xbf16, #tpu.memory_space<vmem>>, vector<1x1x128x128xbf16>
    %72 = vector.shape_cast %71 : vector<1x1x128x128xbf16> to vector<128x128xbf16>
    %cst_40 = arith.constant dense<0.000000e+00> : vector<256x128xf32>
    %73 = tpu.matmul %70, %72, %cst_40 {dimension_numbers = #tpu.dot_dimension_numbers<[1], [0], [0], [1], [0, 0, 1, 1], [], []>} : vector<256x128xbf16>, vector<128x128xbf16>, vector<256x128xf32> -> vector<256x128xf32>
    %74 = arith.addf %68, %73 : vector<256x128xf32>
    %75 = vector.extract_strided_slice %52 {offsets = [0, 0, 0], sizes = [16, 16, 128], strides = [1, 1, 1]} : vector<20x16x128xbf16> to vector<16x16x128xbf16>
    %76 = vector.shape_cast %75 : vector<16x16x128xbf16> to vector<256x128xbf16>
    %c0_41 = arith.constant 0 : index
    %c1_42 = arith.constant 1 : index
    %c0_43 = arith.constant 0 : index
    %c0_44 = arith.constant 0 : index
    %77 = vector.load %arg5[%c0_41, %c1_42, %c0_43, %c0_44] : memref<3x3x128x128xbf16, #tpu.memory_space<vmem>>, vector<1x1x128x128xbf16>
    %78 = vector.shape_cast %77 : vector<1x1x128x128xbf16> to vector<128x128xbf16>
    %cst_45 = arith.constant dense<0.000000e+00> : vector<256x128xf32>
    %79 = tpu.matmul %76, %78, %cst_45 {dimension_numbers = #tpu.dot_dimension_numbers<[1], [0], [0], [1], [0, 0, 1, 1], [], []>} : vector<256x128xbf16>, vector<128x128xbf16>, vector<256x128xf32> -> vector<256x128xf32>
    %80 = arith.addf %74, %79 : vector<256x128xf32>
    %81 = vector.extract_strided_slice %52 {offsets = [2, 0, 0], sizes = [16, 16, 128], strides = [1, 1, 1]} : vector<20x16x128xbf16> to vector<16x16x128xbf16>
    %82 = vector.shape_cast %81 : vector<16x16x128xbf16> to vector<256x128xbf16>
    %c1_46 = arith.constant 1 : index
    %c1_47 = arith.constant 1 : index
    %c0_48 = arith.constant 0 : index
    %c0_49 = arith.constant 0 : index
    %83 = vector.load %arg5[%c1_46, %c1_47, %c0_48, %c0_49] : memref<3x3x128x128xbf16, #tpu.memory_space<vmem>>, vector<1x1x128x128xbf16>
    %84 = vector.shape_cast %83 : vector<1x1x128x128xbf16> to vector<128x128xbf16>
    %cst_50 = arith.constant dense<0.000000e+00> : vector<256x128xf32>
    %85 = tpu.matmul %82, %84, %cst_50 {dimension_numbers = #tpu.dot_dimension_numbers<[1], [0], [0], [1], [0, 0, 1, 1], [], []>} : vector<256x128xbf16>, vector<128x128xbf16>, vector<256x128xf32> -> vector<256x128xf32>
    %86 = arith.addf %80, %85 : vector<256x128xf32>
    %87 = vector.extract_strided_slice %52 {offsets = [4, 0, 0], sizes = [16, 16, 128], strides = [1, 1, 1]} : vector<20x16x128xbf16> to vector<16x16x128xbf16>
    %88 = vector.shape_cast %87 : vector<16x16x128xbf16> to vector<256x128xbf16>
    %c2_51 = arith.constant 2 : index
    %c1_52 = arith.constant 1 : index
    %c0_53 = arith.constant 0 : index
    %c0_54 = arith.constant 0 : index
    %89 = vector.load %arg5[%c2_51, %c1_52, %c0_53, %c0_54] : memref<3x3x128x128xbf16, #tpu.memory_space<vmem>>, vector<1x1x128x128xbf16>
    %90 = vector.shape_cast %89 : vector<1x1x128x128xbf16> to vector<128x128xbf16>
    %cst_55 = arith.constant dense<0.000000e+00> : vector<256x128xf32>
    %91 = tpu.matmul %88, %90, %cst_55 {dimension_numbers = #tpu.dot_dimension_numbers<[1], [0], [0], [1], [0, 0, 1, 1], [], []>} : vector<256x128xbf16>, vector<128x128xbf16>, vector<256x128xf32> -> vector<256x128xf32>
    %92 = arith.addf %86, %91 : vector<256x128xf32>
    %cst_56 = arith.constant 0.000000e+00 : bf16
    %93 = vector.broadcast %cst_56 : bf16 to vector<20x2x128xbf16>
    %94 = vector.extract_strided_slice %52 {offsets = [0, 2, 0], sizes = [20, 14, 128], strides = [1, 1, 1]} : vector<20x16x128xbf16> to vector<20x14x128xbf16>
    %95 = tpu.concatenate %94, %93 in 1 : vector<20x14x128xbf16>, vector<20x2x128xbf16> -> vector<20x16x128xbf16>
    %96 = vector.extract_strided_slice %95 {offsets = [0, 0, 0], sizes = [16, 16, 128], strides = [1, 1, 1]} : vector<20x16x128xbf16> to vector<16x16x128xbf16>
    %97 = vector.shape_cast %96 : vector<16x16x128xbf16> to vector<256x128xbf16>
    %c0_57 = arith.constant 0 : index
    %c2_58 = arith.constant 2 : index
    %c0_59 = arith.constant 0 : index
    %c0_60 = arith.constant 0 : index
    %98 = vector.load %arg5[%c0_57, %c2_58, %c0_59, %c0_60] : memref<3x3x128x128xbf16, #tpu.memory_space<vmem>>, vector<1x1x128x128xbf16>
    %99 = vector.shape_cast %98 : vector<1x1x128x128xbf16> to vector<128x128xbf16>
    %cst_61 = arith.constant dense<0.000000e+00> : vector<256x128xf32>
    %100 = tpu.matmul %97, %99, %cst_61 {dimension_numbers = #tpu.dot_dimension_numbers<[1], [0], [0], [1], [0, 0, 1, 1], [], []>} : vector<256x128xbf16>, vector<128x128xbf16>, vector<256x128xf32> -> vector<256x128xf32>
    %101 = arith.addf %92, %100 : vector<256x128xf32>
    %102 = vector.extract_strided_slice %95 {offsets = [2, 0, 0], sizes = [16, 16, 128], strides = [1, 1, 1]} : vector<20x16x128xbf16> to vector<16x16x128xbf16>
    %103 = vector.shape_cast %102 : vector<16x16x128xbf16> to vector<256x128xbf16>
    %c1_62 = arith.constant 1 : index
    %c2_63 = arith.constant 2 : index
    %c0_64 = arith.constant 0 : index
    %c0_65 = arith.constant 0 : index
    %104 = vector.load %arg5[%c1_62, %c2_63, %c0_64, %c0_65] : memref<3x3x128x128xbf16, #tpu.memory_space<vmem>>, vector<1x1x128x128xbf16>
    %105 = vector.shape_cast %104 : vector<1x1x128x128xbf16> to vector<128x128xbf16>
    %cst_66 = arith.constant dense<0.000000e+00> : vector<256x128xf32>
    %106 = tpu.matmul %103, %105, %cst_66 {dimension_numbers = #tpu.dot_dimension_numbers<[1], [0], [0], [1], [0, 0, 1, 1], [], []>} : vector<256x128xbf16>, vector<128x128xbf16>, vector<256x128xf32> -> vector<256x128xf32>
    %107 = arith.addf %101, %106 : vector<256x128xf32>
    %108 = vector.extract_strided_slice %95 {offsets = [4, 0, 0], sizes = [16, 16, 128], strides = [1, 1, 1]} : vector<20x16x128xbf16> to vector<16x16x128xbf16>
    %109 = vector.shape_cast %108 : vector<16x16x128xbf16> to vector<256x128xbf16>
    %c2_67 = arith.constant 2 : index
    %c2_68 = arith.constant 2 : index
    %c0_69 = arith.constant 0 : index
    %c0_70 = arith.constant 0 : index
    %110 = vector.load %arg5[%c2_67, %c2_68, %c0_69, %c0_70] : memref<3x3x128x128xbf16, #tpu.memory_space<vmem>>, vector<1x1x128x128xbf16>
    %111 = vector.shape_cast %110 : vector<1x1x128x128xbf16> to vector<128x128xbf16>
    %cst_71 = arith.constant dense<0.000000e+00> : vector<256x128xf32>
    %112 = tpu.matmul %109, %111, %cst_71 {dimension_numbers = #tpu.dot_dimension_numbers<[1], [0], [0], [1], [0, 0, 1, 1], [], []>} : vector<256x128xbf16>, vector<128x128xbf16>, vector<256x128xf32> -> vector<256x128xf32>
    %113 = arith.addf %107, %112 : vector<256x128xf32>
    %c0_72 = arith.constant 0 : index
    %c0_73 = arith.constant 0 : index
    %114 = vector.load %arg6[%c0_72, %c0_73] : memref<1x128xf32, #tpu.memory_space<vmem>>, vector<1x128xf32>
    %115 = vector.broadcast %114 : vector<1x128xf32> to vector<256x128xf32>
    %116 = arith.addf %113, %115 : vector<256x128xf32>
    %cst_74 = arith.constant 0.000000e+00 : f32
    %117 = vector.broadcast %cst_74 : f32 to vector<256x128xf32>
    %118 = arith.maximumf %116, %117 : vector<256x128xf32>
    %119 = arith.truncf %118 : vector<256x128xf32> to vector<256x128xbf16>
    %c0_75 = arith.constant 0 : index
    %c0_76 = arith.constant 0 : index
    %120 = vector.load %arg7[%c0_75, %c0_76] : memref<128x128xbf16, #tpu.memory_space<vmem>>, vector<128x128xbf16>
    %cst_77 = arith.constant dense<0.000000e+00> : vector<256x128xf32>
    %121 = tpu.matmul %119, %120, %cst_77 {dimension_numbers = #tpu.dot_dimension_numbers<[1], [0], [0], [1], [0, 0, 1, 1], [], []>} : vector<256x128xbf16>, vector<128x128xbf16>, vector<256x128xf32> -> vector<256x128xf32>
    %c0_78 = arith.constant 0 : index
    %c0_79 = arith.constant 0 : index
    %122 = vector.load %arg8[%c0_78, %c0_79] : memref<1x128xf32, #tpu.memory_space<vmem>>, vector<1x128xf32>
    %123 = vector.broadcast %122 : vector<1x128xf32> to vector<256x128xf32>
    %124 = arith.addf %121, %123 : vector<256x128xf32>
    %cst_80 = arith.constant 0.000000e+00 : f32
    %125 = vector.broadcast %cst_80 : f32 to vector<256x128xf32>
    %126 = arith.maximumf %124, %125 : vector<256x128xf32>
    %127 = vector.extract_strided_slice %28 {offsets = [2, 0, 0], sizes = [16, 16, 128], strides = [1, 1, 1]} : vector<20x16x128xbf16> to vector<16x16x128xbf16>
    %128 = vector.shape_cast %127 : vector<16x16x128xbf16> to vector<256x128xbf16>
    %c0_81 = arith.constant 0 : index
    %c0_82 = arith.constant 0 : index
    %129 = vector.load %arg9[%c0_81, %c0_82] : memref<128x128xbf16, #tpu.memory_space<vmem>>, vector<128x128xbf16>
    %cst_83 = arith.constant dense<0.000000e+00> : vector<256x128xf32>
    %130 = tpu.matmul %128, %129, %cst_83 {dimension_numbers = #tpu.dot_dimension_numbers<[1], [0], [0], [1], [0, 0, 1, 1], [], []>} : vector<256x128xbf16>, vector<128x128xbf16>, vector<256x128xf32> -> vector<256x128xf32>
    %c0_84 = arith.constant 0 : index
    %c0_85 = arith.constant 0 : index
    %131 = vector.load %arg10[%c0_84, %c0_85] : memref<1x128xf32, #tpu.memory_space<vmem>>, vector<1x128xf32>
    %132 = vector.broadcast %131 : vector<1x128xf32> to vector<256x128xf32>
    %133 = arith.addf %130, %132 : vector<256x128xf32>
    %cst_86 = arith.constant 0.000000e+00 : f32
    %134 = vector.broadcast %cst_86 : f32 to vector<256x128xf32>
    %135 = arith.maximumf %133, %134 : vector<256x128xf32>
    %136 = arith.addf %126, %135 : vector<256x128xf32>
    %cst_87 = arith.constant 0.000000e+00 : f32
    %137 = vector.broadcast %cst_87 : f32 to vector<256x128xf32>
    %138 = arith.maximumf %136, %137 : vector<256x128xf32>
    %139 = arith.truncf %138 : vector<256x128xf32> to vector<256x128xbf16>
    %140 = vector.shape_cast %139 : vector<256x128xbf16> to vector<1x16x16x128xbf16>
    %c0_88 = arith.constant 0 : index
    %c0_89 = arith.constant 0 : index
    %c0_90 = arith.constant 0 : index
    %c0_91 = arith.constant 0 : index
    %141 = vector.load %arg11[%c0_88, %c0_89, %c0_90, %c0_91] : memref<1x16x16x128xbf16, #tpu.memory_space<vmem>>, vector<1x16x16x128xbf16>
    tpu.vector_store %arg11[%c0_88, %c0_89, %c0_90, %c0_91], %140 {strides = array<i32>} : memref<1x16x16x128xbf16, #tpu.memory_space<vmem>>, vector<1x16x16x128xbf16>,
    return
  }
  func.func @transform_1(%arg0: i32, %arg1: i32) -> (i32, i32) {
    %c0_i32 = arith.constant 0 : i32
    %c0_i32_0 = arith.constant 0 : i32
    %c0_i32_1 = arith.constant 0 : i32
    return %c0_i32, %c0_i32_0 : i32, i32
  }
  func.func @transform_2(%arg0: i32, %arg1: i32) -> (i32, i32) {
    %c0_i32 = arith.constant 0 : i32
    %c0_i32_0 = arith.constant 0 : i32
    %c0_i32_1 = arith.constant 0 : i32
    return %c0_i32, %c0_i32_0 : i32, i32
  }
  func.func @transform_3(%arg0: i32, %arg1: i32) -> (i32, i32, i32, i32) {
    %c0_i32 = arith.constant 0 : i32
    %c0_i32_0 = arith.constant 0 : i32
    %c0_i32_1 = arith.constant 0 : i32
    %c0_i32_2 = arith.constant 0 : i32
    %c0_i32_3 = arith.constant 0 : i32
    return %c0_i32, %c0_i32_0, %c0_i32_1, %c0_i32_2 : i32, i32, i32, i32
  }
  func.func @transform_4(%arg0: i32, %arg1: i32) -> (i32, i32) {
    %c0_i32 = arith.constant 0 : i32
    %c0_i32_0 = arith.constant 0 : i32
    %c0_i32_1 = arith.constant 0 : i32
    return %c0_i32, %c0_i32_0 : i32, i32
  }
  func.func @transform_5(%arg0: i32, %arg1: i32) -> (i32, i32) {
    %c0_i32 = arith.constant 0 : i32
    %c0_i32_0 = arith.constant 0 : i32
    %c0_i32_1 = arith.constant 0 : i32
    return %c0_i32, %c0_i32_0 : i32, i32
  }
  func.func @transform_6(%arg0: i32, %arg1: i32) -> (i32, i32) {
    %c0_i32 = arith.constant 0 : i32
    %c0_i32_0 = arith.constant 0 : i32
    %c0_i32_1 = arith.constant 0 : i32
    return %c0_i32, %c0_i32_0 : i32, i32
  }
  func.func @transform_7(%arg0: i32, %arg1: i32) -> (i32, i32) {
    %c0_i32 = arith.constant 0 : i32
    %c0_i32_0 = arith.constant 0 : i32
    %c0_i32_1 = arith.constant 0 : i32
    return %c0_i32, %c0_i32_0 : i32, i32
  }
  func.func @transform_8(%arg0: i32, %arg1: i32) -> (i32, i32) {
    %c0_i32 = arith.constant 0 : i32
    %c0_i32_0 = arith.constant 0 : i32
    %c0_i32_1 = arith.constant 0 : i32
    return %c0_i32, %c0_i32_0 : i32, i32
  }
  func.func @transform_9(%arg0: i32, %arg1: i32) -> (i32, i32, i32, i32) {
    %c0_i32 = arith.constant 0 : i32
    %c0_i32_0 = arith.constant 0 : i32
    %c0_i32_1 = arith.constant 0 : i32
    return %arg0, %arg1, %c0_i32, %c0_i32_0 : i32, i32, i32, i32
  }
}

</mosaic_0001>

<bundles_post_ra>
// kernel: bottleneck_forward.1
= control target key start
LH: loop header
LB: loop body
LE: loop exit
PB: predicated region body
PF: predicated region fallthrough
CT: control target
= control target key end

     0   :  { %s6357_s30 = smov 0   ;;  %s6359_s10 = smov 0   ;;  %s7714_s0 = inlined_call_operand.vmem [shape: bf16[2,20,16,128], index: 0, kind: input, shape index: {}]   ;;  %s7715_s1 = inlined_call_operand.vmem [shape: bf16[128,128], index: 1, kind: input, shape index: {}]   ;;  %s7716_s2 = inlined_call_operand.vmem [shape: f32[1,128], index: 2, kind: input, shape index: {}]   ;;  %s7717_s3 = inlined_call_operand.vmem [shape: bf16[3,3,128,128], index: 3, kind: input, shape index: {}]   ;;  %s7718_s4 = inlined_call_operand.vmem [shape: f32[1,128], index: 4, kind: input, shape index: {}]   ;;  %s7719_s5 = inlined_call_operand.vmem [shape: bf16[128,128], index: 5, kind: input, shape index: {}]   ;;  %s7720_s6 = inlined_call_operand.vmem [shape: f32[1,128], index: 6, kind: input, shape index: {}]   ;;  %s7721_s7 = inlined_call_operand.vmem [shape: bf16[128,128], index: 7, kind: input, shape index: {}]   ;;  %s7722_s8 = inlined_call_operand.vmem [shape: f32[1,128], index: 8, kind: input, shape index: {}]   ;;  %s7723_s9 = inlined_call_operand.vmem [shape: bf16[2,16,16,128], index: 9, kind: output, shape index: {}]  }
   0x1   :  { %s6361_s11 = smov 0  }
   0x2 LB: > { %s31_s12 = sadd.s32 1, %s6300_s10  ;;  %p4441_p0 = scmp.ge.s32.totalorder %s6304_s11, 1  ;;  %s6304_s11 = sphi %s6361_s11, %s19_s11   ;;  %s6300_s10 = sphi %s6359_s10, %s7747_s10   ;;  %s6296_s30 = sphi %s6357_s30, %s7746_s30  }
   0x3   : > { %p33_p1 = scmp.ge.s32.totalorder %s31_s12, 2  ;;  %p267_p2 = scmp.lt.s32.totalorder %s6304_s11, 3 }
   0x5   : > { %s7749_s12 = smov (%p33_p1, %s31_s12), 0  ;;  %p268_p3 = pnand %p4441_p0, %p267_p2 }
   0x7   : > { %271 = sbr.rel (%p268_p3) target bundleno = 1235 (0x4d3), region = 52 }
   0xe   : > { %p302_p4 = scmp.lt.s32.totalorder %s6296_s30, 1  ;;  %p314_p5 = scmp.lt.s32.totalorder %s6296_s30, 0 }
   0xf   : > { %s315_s13 = ssub.s32 0, %s6296_s30  ;;  %p4447_p7 = scmp.ne.s32.totalorder %s6296_s30, 0 }
  0x10   : > { %s303_s14 = scalar_select %p302_p4, %s6296_s30, 1 }
  0x11   : > { %s4444_s15 = smin.u32 %s6296_s30, %s315_s13  ;;  %329 = sbr.rel (%p4447_p7) target bundleno = 38 (0x26), region = 56 }
  0x12   : > { %s4862_s16 = sshll.u32 %s303_s14, 7  ;;  %s317_s17 = sand.u32 1, %s4444_s15  }
  0x13   : > { %s6385_s20 = scalar_lea.vmem %s7723_s9, %s4862_s16  ;;  %s318_s21 = ssub.s32 0, %s317_s17 }
  0x14   : > { %s7751_s21 = smov (!%p314_p5, %s318_s21), %s317_s17  ;;  %s4863_s23 = smul.u32 (!%p4447_p7), 160, %s6296_s30 }
  0x15   : > { %p4446_p6 = scmp.lt.s32.totalorder %s7751_s21, 0  ;;  %s324_s22 = sadd.s32 2, %s7751_s21 }
  0x16   : > { %s6395_s27 = scalar_lea.vmem (!%p4447_p7), %s7714_s0, %s4863_s23 }
  0x17   : > { %s7753_s22 = smov (!%p4446_p6, %s324_s22), %s7751_s21  ;;  %v372_v0 = vld [vmem:[%s6395_s27] sm:$0xff] (!%p4447_p7)  ;;  %v374_v1 = vld [vmem:[%s6395_s27 + $0x8] sm:$0xff] (!%p4447_p7)  ;;  %v376_v2 = vld [vmem:[%s6395_s27 + $0x10] sm:$0xff] (!%p4447_p7) }
  0x18   : > { %s4864_s24 = smul.u32 160, %s7753_s22  ;;  %v378_v3 = vld [vmem:[%s6395_s27 + $0x18] sm:$0xff]  ;;  %v380_v4 = vld [vmem:[%s6395_s27 + $0x20] sm:$0xff]  ;;  %v382_v5 = vld [vmem:[%s6395_s27 + $0x28] sm:$0xff]  ;;  %s339_s29 = scalar_lea.sflag [#allocation3], %s7753_s22 }
  0x19   : > { %v384_v6 = vld [vmem:[%s6395_s27 + $0x30] sm:$0xff]  ;;  %v386_v7 = vld [vmem:[%s6395_s27 + $0x38] sm:$0xff]  ;;  %v388_v8 = vld [vmem:[%s6395_s27 + $0x40] sm:$0xff] }
  0x1a   : > { %s6400_s28 = scalar_lea.vmem [#allocation2], %s4864_s24  ;;  %v390_v9 = vld [vmem:[%s6395_s27 + $0x48] sm:$0xff]  ;;  %v392_v10 = vld [vmem:[%s6395_s27 + $0x50] sm:$0xff]  ;;  %v394_v11 = vld [vmem:[%s6395_s27 + $0x58] sm:$0xff] }
  0x1b   : > { %373 = vst [vmem:[%s6400_s28] sm:$0xff] %v372_v0  ;;  %375 = vst [vmem:[%s6400_s28 + $0x8] sm:$0xff] %v374_v1  ;;  %v396_v12 = vld [vmem:[%s6395_s27 + $0x60] sm:$0xff]  ;;  %v398_v13 = vld [vmem:[%s6395_s27 + $0x68] sm:$0xff] }
  0x1c   : > { %377 = vst [vmem:[%s6400_s28 + $0x10] sm:$0xff] %v376_v2  ;;  %379 = vst [vmem:[%s6400_s28 + $0x18] sm:$0xff] %v378_v3  ;;  %v400_v14 = vld [vmem:[%s6395_s27 + $0x70] sm:$0xff]  ;;  %v402_v15 = vld [vmem:[%s6395_s27 + $0x78] sm:$0xff] }
  0x1d   : > { %381 = vst [vmem:[%s6400_s28 + $0x20] sm:$0xff] %v380_v4  ;;  %383 = vst [vmem:[%s6400_s28 + $0x28] sm:$0xff] %v382_v5  ;;  %v404_v16 = vld [vmem:[%s6395_s27 + $0x80] sm:$0xff]  ;;  %v406_v17 = vld [vmem:[%s6395_s27 + $0x88] sm:$0xff] }
  0x1e   : > { %385 = vst [vmem:[%s6400_s28 + $0x30] sm:$0xff] %v384_v6  ;;  %387 = vst [vmem:[%s6400_s28 + $0x38] sm:$0xff] %v386_v7  ;;  %v408_v18 = vld [vmem:[%s6395_s27 + $0x90] sm:$0xff]  ;;  %v410_v19 = vld [vmem:[%s6395_s27 + $0x98] sm:$0xff] }
  0x1f   : > { %389 = vst [vmem:[%s6400_s28 + $0x40] sm:$0xff] %v388_v8  ;;  %391 = vst [vmem:[%s6400_s28 + $0x48] sm:$0xff] %v390_v9 }
  0x20   : > { %393 = vst [vmem:[%s6400_s28 + $0x50] sm:$0xff] %v392_v10  ;;  %395 = vst [vmem:[%s6400_s28 + $0x58] sm:$0xff] %v394_v11 }
  0x21   : > { %397 = vst [vmem:[%s6400_s28 + $0x60] sm:$0xff] %v396_v12  ;;  %399 = vst [vmem:[%s6400_s28 + $0x68] sm:$0xff] %v398_v13 }
  0x22   : > { %401 = vst [vmem:[%s6400_s28 + $0x70] sm:$0xff] %v400_v14  ;;  %403 = vst [vmem:[%s6400_s28 + $0x78] sm:$0xff] %v402_v15 }
  0x23   : > { %405 = vst [vmem:[%s6400_s28 + $0x80] sm:$0xff] %v404_v16  ;;  %407 = vst [vmem:[%s6400_s28 + $0x88] sm:$0xff] %v406_v17 }
  0x24   : > { %409 = vst [vmem:[%s6400_s28 + $0x90] sm:$0xff] %v408_v18  ;;  %411 = vst [vmem:[%s6400_s28 + $0x98] sm:$0xff] %v410_v19 }
  0x25   : > { %419 = vsyncadd %s339_s29, 2560 }
  0x26 PF: > { %s4865_s13 = smul.u32 160, %s7753_s22  ;;  %s424_s15 = scalar_lea.sflag [#allocation3], %s7753_s22 }
  0x28   : > { %s6441_s14 = scalar_lea.vmem [#allocation2], %s4865_s13 }
  0x29   : > { %6292 = dma.done.wait %s424_s15, 2560 }
  0x2a   : > { %6293 = vsyncadd %s424_s15, 4294964736  ;;  %s430_s16 = sadd.s32 1, %s6296_s30 }
  0x2b   : > { %p4451_p8 = scmp.ge.s32.totalorder %s430_s16, 2 }
  0x2c   : > { %s440_s17 = ssub.s32 (!%p4451_p8), 1, %s7753_s22  ;;  %s4866_s18 = smul.u32 (!%p4451_p8), 160, %s430_s16 }
  0x2d   : > { %434 = sbr.rel (%p4451_p8) target bundleno = 60 (0x3c), region = 94  ;;  %s450_s25 = scalar_lea.sflag (!%p4451_p8), [#allocation3], %s440_s17 }
  0x2e   : > { %s4867_s19 = smul.u32 (!%p4451_p8), 160, %s440_s17  ;;  %s6451_s24 = scalar_lea.vmem (!%p4451_p8), %s7714_s0, %s4866_s18 }
  0x2f   : > { %v483_v20 = vld [vmem:[%s6451_s24] sm:$0xff] (!%p4451_p8)  ;;  %v485_v21 = vld [vmem:[%s6451_s24 + $0x8] sm:$0xff] (!%p4451_p8)  ;;  %v487_v22 = vld [vmem:[%s6451_s24 + $0x10] sm:$0xff] (!%p4451_p8) }
  0x30   : > { %s6456_s30 = scalar_lea.vmem (!%p4451_p8), [#allocation2], %s4867_s19  ;;  %v489_v23 = vld [vmem:[%s6451_s24 + $0x18] sm:$0xff] (!%p4451_p8)  ;;  %v491_v24 = vld [vmem:[%s6451_s24 + $0x20] sm:$0xff] (!%p4451_p8)  ;;  %v493_v25 = vld [vmem:[%s6451_s24 + $0x28] sm:$0xff] (!%p4451_p8) }
  0x31   : > { %484 = vst [vmem:[%s6456_s30] sm:$0xff] (!%p4451_p8), %v483_v20  ;;  %486 = vst [vmem:[%s6456_s30 + $0x8] sm:$0xff] (!%p4451_p8), %v485_v21  ;;  %v495_v26 = vld [vmem:[%s6451_s24 + $0x30] sm:$0xff] (!%p4451_p8)  ;;  %v497_v27 = vld [vmem:[%s6451_s24 + $0x38] sm:$0xff] (!%p4451_p8) }
  0x32   : > { %488 = vst [vmem:[%s6456_s30 + $0x10] sm:$0xff] (!%p4451_p8), %v487_v22  ;;  %490 = vst [vmem:[%s6456_s30 + $0x18] sm:$0xff] (!%p4451_p8), %v489_v23  ;;  %v499_v28 = vld [vmem:[%s6451_s24 + $0x40] sm:$0xff] (!%p4451_p8)  ;;  %v501_v29 = vld [vmem:[%s6451_s24 + $0x48] sm:$0xff] (!%p4451_p8) }
  0x33   : > { %492 = vst [vmem:[%s6456_s30 + $0x20] sm:$0xff] (!%p4451_p8), %v491_v24  ;;  %494 = vst [vmem:[%s6456_s30 + $0x28] sm:$0xff] (!%p4451_p8), %v493_v25  ;;  %v503_v30 = vld [vmem:[%s6451_s24 + $0x50] sm:$0xff] (!%p4451_p8)  ;;  %v505_v31 = vld [vmem:[%s6451_s24 + $0x58] sm:$0xff] (!%p4451_p8) }
  0x34   : > { %496 = vst [vmem:[%s6456_s30 + $0x30] sm:$0xff] %v495_v26  ;;  %498 = vst [vmem:[%s6456_s30 + $0x38] sm:$0xff] %v497_v27  ;;  %v507_v32 = vld [vmem:[%s6451_s24 + $0x60] sm:$0xff]  ;;  %v509_v33 = vld [vmem:[%s6451_s24 + $0x68] sm:$0xff] }
  0x35   : > { %500 = vst [vmem:[%s6456_s30 + $0x40] sm:$0xff] %v499_v28  ;;  %502 = vst [vmem:[%s6456_s30 + $0x48] sm:$0xff] %v501_v29  ;;  %v511_v34 = vld [vmem:[%s6451_s24 + $0x70] sm:$0xff]  ;;  %v513_v35 = vld [vmem:[%s6451_s24 + $0x78] sm:$0xff] }
  0x36   : > { %504 = vst [vmem:[%s6456_s30 + $0x50] sm:$0xff] %v503_v30  ;;  %506 = vst [vmem:[%s6456_s30 + $0x58] sm:$0xff] %v505_v31  ;;  %v515_v36 = vld [vmem:[%s6451_s24 + $0x80] sm:$0xff]  ;;  %v517_v37 = vld [vmem:[%s6451_s24 + $0x88] sm:$0xff] }
  0x37   : > { %508 = vst [vmem:[%s6456_s30 + $0x60] sm:$0xff] %v507_v32  ;;  %510 = vst [vmem:[%s6456_s30 + $0x68] sm:$0xff] %v509_v33  ;;  %v519_v38 = vld [vmem:[%s6451_s24 + $0x90] sm:$0xff]  ;;  %v521_v39 = vld [vmem:[%s6451_s24 + $0x98] sm:$0xff] }
  0x38   : > { %512 = vst [vmem:[%s6456_s30 + $0x70] sm:$0xff] %v511_v34  ;;  %514 = vst [vmem:[%s6456_s30 + $0x78] sm:$0xff] %v513_v35 }
  0x39   : > { %516 = vst [vmem:[%s6456_s30 + $0x80] sm:$0xff] %v515_v36  ;;  %518 = vst [vmem:[%s6456_s30 + $0x88] sm:$0xff] %v517_v37 }
  0x3a   : > { %520 = vst [vmem:[%s6456_s30 + $0x90] sm:$0xff] %v519_v38  ;;  %522 = vst [vmem:[%s6456_s30 + $0x98] sm:$0xff] %v521_v39 }
  0x3b   : > { %530 = vsyncadd %s450_s25, 2560 }
  0x3c PF: > { %v6168_v40 = vld [vmem:[%s7715_s1] sm:$0xff]   ;;  %v6169_v41 = vld [vmem:[%s7715_s1 + $0x8] sm:$0xff]   ;;  %v6170_v42 = vld [vmem:[%s7715_s1 + $0x10] sm:$0xff]   ;;  %vm1076_vm0 = vcmask 1040384   ;;  %vm2641_vm2 = vcmask 1046528  }
  0x3d   : > { %5287 = vmatprep.subr.bf16.mxu0 %v6168_v40  ;;  %v6171_v43 = vld [vmem:[%s7715_s1 + $0x18] sm:$0xff]   ;;  %v6172_v45 = vld [vmem:[%s7715_s1 + $0x20] sm:$0xff]   ;;  %v6173_v46 = vld [vmem:[%s7715_s1 + $0x28] sm:$0xff]  }
  0x3e   : > { %5288 = vmatpush3.bf16.msra.mxu0 %v6168_v40  ;;  %v6178_v47 = vld [vmem:[%s7717_s3 + $0x180] sm:$0xff]   ;;  %v6174_v48 = vld [vmem:[%s7715_s1 + $0x30] sm:$0xff]   ;;  %v6175_v49 = vld [vmem:[%s7715_s1 + $0x38] sm:$0xff]  }
  0x3f   : > { %5289 = vmatprep.subr.bf16.mxu0 %v6169_v41  ;;  %5439 = vmatprep.subr.bf16.mxu1 %v6178_v47  ;;  %v6176_v50 = vld [vmem:[%s7717_s3 + $0xc0] sm:$0xff]   ;;  %v6177_v53 = vld [vmem:[%s7717_s3 + $0xc8] sm:$0xff]   ;;  %v6179_v54 = vld [vmem:[%s7717_s3 + $0xd0] sm:$0xff]  }
  0x40   : > { %5440 = vmatpush3.bf16.msra.mxu1 %v6178_v47  ;;  %v6180_v6 = vld [vmem:[%s7717_s3 + $0x188] sm:$0xff]   ;;  %v6181_v7 = vld [vmem:[%s7717_s3 + $0xd8] sm:$0xff]   ;;  %v6182_v8 = vld [vmem:[%s7717_s3 + $0x190] sm:$0xff]  }
  0x41   : > { %5441 = vmatprep.subr.bf16.mxu1 %v6180_v6  ;;  %v6183_v9 = vld [vmem:[%s7717_s3 + $0xe0] sm:$0xff]   ;;  %v6184_v10 = vld [vmem:[%s7717_s3 + $0x198] sm:$0xff]   ;;  %v6185_v11 = vld [vmem:[%s7717_s3 + $0xe8] sm:$0xff]  }
  0x42   : > { %5290 = vmatpush3.bf16.msra.mxu0 %v6169_v41  ;;  %v549_v12 = vld [vmem:[%s6441_s14 + $0x90] sm:$0xff]  ;;  %v6186_v13 = vld [vmem:[%s7717_s3 + $0x1a0] sm:$0xff]   ;;  %v550_v15 = vld [vmem:[%s6441_s14 + $0x98] sm:$0xff] }
  0x43   : > { %5291 = vmatprep.subr.bf16.mxu0 %v6170_v42  ;;  %v531_v44 = vld [vmem:[%s6441_s14] sm:$0xff]  ;;  %v532_v51 = vld [vmem:[%s6441_s14 + $0x8] sm:$0xff]  ;;  %v533_v52 = vld [vmem:[%s6441_s14 + $0x10] sm:$0xff] }
  0x44   : > { %5303 = vmatprep.mubr.bf16.mxu0 %v531_v44  ;;  %v534_v55 = vld [vmem:[%s6441_s14 + $0x18] sm:$0xff]  ;;  %v535_v56 = vld [vmem:[%s6441_s14 + $0x20] sm:$0xff]  ;;  %v536_v57 = vld [vmem:[%s6441_s14 + $0x28] sm:$0xff]  ;;  %5442 = vmatpush3.bf16.msra.mxu1 %v6180_v6 }
  0x45   : > { %v537_v58 = vld [vmem:[%s6441_s14 + $0x30] sm:$0xff]  ;;  %v538_v59 = vld [vmem:[%s6441_s14 + $0x38] sm:$0xff]  ;;  %v539_v60 = vld [vmem:[%s6441_s14 + $0x40] sm:$0xff]  ;;  %5443 = vmatprep.subr.bf16.mxu1 %v6182_v8 }
  0x46   : > { %5292 = vmatpush3.bf16.msra.mxu0 %v6170_v42  ;;  %v540_v61 = vld [vmem:[%s6441_s14 + $0x48] sm:$0xff]  ;;  %v541_v62 = vld [vmem:[%s6441_s14 + $0x50] sm:$0xff]  ;;  %v542_v63 = vld [vmem:[%s6441_s14 + $0x58] sm:$0xff] }
  0x47   : > { %5293 = vmatprep.subr.bf16.mxu0 %v6171_v43  ;;  %v543_v0 = vld [vmem:[%s6441_s14 + $0x60] sm:$0xff]  ;;  %v544_v1 = vld [vmem:[%s6441_s14 + $0x68] sm:$0xff]  ;;  %v545_v2 = vld [vmem:[%s6441_s14 + $0x70] sm:$0xff] }
  0x48   : > { %v546_v3 = vld [vmem:[%s6441_s14 + $0x78] sm:$0xff]  ;;  %v547_v4 = vld [vmem:[%s6441_s14 + $0x80] sm:$0xff]  ;;  %v548_v5 = vld [vmem:[%s6441_s14 + $0x88] sm:$0xff]  ;;  %5444 = vmatpush3.bf16.msra.mxu1 %v6182_v8 }
  0x49   : > { %5445 = vmatprep.subr.bf16.mxu1 %v6184_v10  ;;  %v6187_v14 = vld [vmem:[%s7717_s3 + $0xf0] sm:$0xff]   ;;  %v6188_v16 = vld [vmem:[%s7717_s3 + $0x1a8] sm:$0xff]   ;;  %v6189_v17 = vld [vmem:[%s7717_s3 + $0xf8] sm:$0xff]  }
  0x4a   : > { %5294 = vmatpush3.bf16.msra.mxu0 %v6171_v43  ;;  %v6190_v18 = vld [vmem:[%s7717_s3 + $0x1b0] sm:$0xff]   ;;  %v6191_v19 = vld [vmem:[%s7717_s3 + $0x1b8] sm:$0xff]   ;;  %v6592_v20 = vld [vmem:[%s7717_s3 + $0x40] sm:$0xff]  }
  0x4b   : > { %5295 = vmatprep.subr.bf16.mxu0 %v6172_v45  ;;  %v6196_v21 = vld [vmem:[%s7717_s3] sm:$0xff]   ;;  %vm6612_vm1 = vmneg %vm1076_vm0  ;;  %v6200_v6 = vld [vmem:[%s7717_s3 + $0x18] sm:$0xff]  }
  0x4c   : > { %5446 = vmatpush3.bf16.msra.mxu1 %v6184_v10  ;;  %v6601_v26 = vld [vmem:[%s7716_s2] ss:$0 sm:$0xff] }
  0x4d   : > { %5447 = vmatprep.subr.bf16.mxu1 %v6186_v13 }
  0x4e   : > { %5296 = vmatpush3.bf16.msra.mxu0 %v6172_v45 }
  0x4f   : > { %5297 = vmatprep.subr.bf16.mxu0 %v6173_v46 }
  0x50   : > { %5448 = vmatpush3.bf16.msra.mxu1 %v6186_v13  ;;  %v6194_v13 = vld [vmem:[%s7717_s3 + $0x50] sm:$0xff]  }
  0x51   : > { %5449 = vmatprep.subr.bf16.mxu1 %v6188_v16 }
  0x52   : > { %5298 = vmatpush3.bf16.msra.mxu0 %v6173_v46 }
  0x53   : > { %5299 = vmatprep.subr.bf16.mxu0 %v6174_v48 }
  0x54   : > { %5450 = vmatpush3.bf16.msra.mxu1 %v6188_v16 }
  0x55   : > { %5451 = vmatprep.subr.bf16.mxu1 %v6190_v18 }
  0x56   : > { %5300 = vmatpush3.bf16.msra.mxu0 %v6174_v48 }
  0x57   : > { %5301 = vmatprep.subr.bf16.mxu0 %v6175_v49 }
  0x58   : > { %5452 = vmatpush3.bf16.msra.mxu1 %v6190_v18 }
  0x59   : > { %5453 = vmatprep.subr.bf16.mxu1 %v6191_v19 }
  0x5a   : > { %5302 = vmatpush3.bf16.msra.mxu0 %v6175_v49 }
  0x5b   : > { %5343 = vmatprep.subr.bf16.mxu0 %v6176_v50 }
  0x5c   : > { %5454 = vmatpush3.bf16.msra.mxu1 %v6191_v19 }
  0x5d   : > { %5304 = vmatmul.mubr.bf16.vlgmr.msra.gmra.mrb[0].mxu0 %v532_v51  ;;  %5487 = vmatprep.subr.bf16.mxu1 %v6592_v20  ;;  %v6197_v51 = vld [vmem:[%s7717_s3 + $0x8] sm:$0xff]  }
  0x5e   : > { %5307 = vmatprep.mubr.bf16.mxu0 %v533_v52  ;;  %5344 = vmatpush3.bf16.msra.mxu0 %v6176_v50 }
  0x5f   : > { %5345 = vmatprep.subr.bf16.mxu0 %v6177_v53 }
  0x62   : > { %5346 = vmatpush3.bf16.msra.mxu0 %v6177_v53 }
  0x63   : > { %5347 = vmatprep.subr.bf16.mxu0 %v6179_v54 }
  0x65   : > { %5308 = vmatmul.mubr.bf16.gmra.mrb[4].mxu0 %v534_v55 }
  0x66   : > { %5311 = vmatprep.mubr.bf16.mxu0 %v535_v56  ;;  %5348 = vmatpush3.bf16.msra.mxu0 %v6179_v54 }
  0x67   : > { %5349 = vmatprep.subr.bf16.mxu0 %v6181_v7 }
  0x6a   : > { %5350 = vmatpush3.bf16.msra.mxu0 %v6181_v7 }
  0x6b   : > { %5351 = vmatprep.subr.bf16.mxu0 %v6183_v9 }
  0x6d   : > { %5312 = vmatmul.mubr.bf16.gmra.mrb[8].mxu0 %v536_v57 }
  0x6e   : > { %5315 = vmatprep.mubr.bf16.mxu0 %v537_v58  ;;  %5352 = vmatpush3.bf16.msra.mxu0 %v6183_v9  ;;  %v6199_v58 = vld [vmem:[%s7717_s3 + $0x10] sm:$0xff]  }
  0x6f   : > { %5353 = vmatprep.subr.bf16.mxu0 %v6185_v11 }
  0x72   : > { %5354 = vmatpush3.bf16.msra.mxu0 %v6185_v11 }
  0x73   : > { %5355 = vmatprep.subr.bf16.mxu0 %v6187_v14 }
  0x75   : > { %5316 = vmatmul.mubr.bf16.gmra.mrb[12].mxu0 %v538_v59 }
  0x76   : > { %5319 = vmatprep.mubr.bf16.mxu0 %v539_v60  ;;  %5356 = vmatpush3.bf16.msra.mxu0 %v6187_v14  ;;  %v6202_v14 = vld [vmem:[%s7717_s3 + $0x20] sm:$0xff]  }
  0x77   : > { %5357 = vmatprep.subr.bf16.mxu0 %v6189_v17 }
  0x7a   : > { %5358 = vmatpush3.bf16.msra.mxu0 %v6189_v17 }
  0x7b   : > { %5391 = vmatprep.subr.bf16.mxu0 %v6196_v21 }
  0x7d   : > { %5320 = vmatmul.mubr.bf16.gmra.mrb[16].mxu0 %v540_v61 }
  0x7e   : > { %5323 = vmatprep.mubr.bf16.mxu0 %v541_v62 }
  0x85   : > { %5324 = vmatmul.mubr.bf16.gmra.mrb[20].mxu0 %v542_v63 }
  0x86   : > { %5327 = vmatprep.mubr.bf16.mxu0 %v543_v0 }
  0x8d   : > { %5328 = vmatmul.mubr.bf16.gmra.mrb[24].mxu0 %v544_v1 }
  0x8e   : > { %5331 = vmatprep.mubr.bf16.mxu0 %v545_v2 }
  0x95   : > { %5332 = vmatmul.mubr.bf16.gmra.mrb[28].mxu0 %v546_v3 }
  0x96   : > { %5335 = vmatprep.mubr.bf16.mxu0 %v547_v4 }
  0x9d   : > { %5336 = vmatmul.mubr.bf16.gmra.mrb[32].mxu0 %v548_v5  ;;  %v6193_v5 = vld [vmem:[%s7717_s3 + $0x48] sm:$0xff]  }
  0x9e   : > { %5339 = vmatprep.mubr.bf16.mxu0 %v549_v12 }
  0xa5   : > { %5340 = vmatmul.mubr.bf16.gmra.mrb[36].mxu0 %v550_v15 }
 0x130   : > { %v5305_v22 = vpop.f32.mrb[0].mxu0 }
 0x131   : > { %v656_v23 = vpop.f32.mrb[1].mxu0 }
 0x132   : > { %v5306_v24 = vpop.f32.mrb[2].mxu0 }
 0x133   : > { %v659_v25 = vpop.f32.mrb[3].mxu0 }
 0x134   : > { %v6195_v25 = vld [vmem:[%s7717_s3 + $0x58] sm:$0xff]  }
 0x138   : > { %v5309_v27 = vpop.f32.mrb[4].mxu0 }
 0x139   : > { %v681_v28 = vadd.f32 %v5309_v27, %v6601_v26  ;;  %v672_v29 = vpop.f32.mrb[5].mxu0  ;;  %v6203_v27 = vld [vmem:[%s7717_s3 + $0x28] sm:$0xff]  }
 0x13a   : > { %v673_v30 = vadd.f32 %v6601_v26, %v672_v29  ;;  %v5310_v31 = vpop.f32.mrb[6].mxu0 }
 0x13b   : > { %v684_v32 = vadd.f32 %v5310_v31, %v6601_v26  ;;  %v675_v33 = vpop.f32.mrb[7].mxu0  ;;  %v821_v35 = vmax.f32 %v681_v28, 0.0 }
 0x13c   : > { %v676_v34 = vadd.f32 %v6601_v26, %v675_v33  ;;  %v819_v37 = vmax.f32 %v673_v30, 0.0 }
 0x13d   : > { %v822_v36 = vmax.f32 %v684_v32, 0.0 }
 0x13e   : > { %v820_v38 = vmax.f32 %v676_v34, 0.0  ;;  %v6198_v34 = vld [vmem:[%s7717_s3 + $0x60] sm:$0xff]  }
 0x13f   : > { %v6607_v39 = vpack.c.bf16 %v822_v36, %v821_v35  ;;  %v6205_v35 = vld [vmem:[%s7717_s3 + $0x30] sm:$0xff]  }
 0x140   : > { %v6609_v40 = vpack.c.bf16 %v820_v38, %v819_v37  ;;  %v5313_v41 = vpop.f32.mrb[8].mxu0 }
 0x141   : > { %v697_v42 = vadd.f32 %v5313_v41, %v6601_v26  ;;  %v688_v43 = vpop.f32.mrb[9].mxu0  ;;  %v1059_v48 = vrot.slane %v6607_v39, 7 }
 0x142   : > { %v689_v45 = vadd.f32 %v6601_v26, %v688_v43  ;;  %v5314_v46 = vpop.f32.mrb[10].mxu0  ;;  %v1058_v47 = vrot.slane %v6609_v40, 7 }
 0x143   : > { %v700_v49 = vadd.f32 %v5314_v46, %v6601_v26  ;;  %v691_v50 = vpop.f32.mrb[11].mxu0  ;;  %v825_v53 = vmax.f32 %v697_v42, 0.0 }
 0x144   : > { %v692_v52 = vadd.f32 %v6601_v26, %v691_v50  ;;  %5359 = vmatprep.mubr.msk.bf16.mxu0 %vm6612_vm1, %v1058_v47  ;;  %v823_v55 = vmax.f32 %v689_v45, 0.0 }
 0x145   : > { %v826_v54 = vmax.f32 %v700_v49, 0.0  ;;  %5360 = vmatmul.mubr.msk.bf16.vlgmr.msra.gmra.mrb[40].mxu0 %vm6612_vm1, %v1059_v48 }
 0x146   : > { %v824_v56 = vmax.f32 %v692_v52, 0.0  ;;  %5392 = vmatpush3.bf16.msra.mxu0 %v6196_v21  ;;  %v6206_v52 = vld [vmem:[%s7717_s3 + $0x38] sm:$0xff]  }
 0x147   : > { %v6632_v57 = vpack.c.bf16 %v826_v54, %v825_v53  ;;  %5393 = vmatprep.subr.bf16.mxu0 %v6197_v51 }
 0x148   : > { %v6637_v59 = vpack.c.bf16 %v824_v56, %v823_v55  ;;  %v5317_v60 = vpop.f32.mrb[12].mxu0 }
 0x149   : > { %v713_v61 = vadd.f32 %v5317_v60, %v6601_v26  ;;  %v704_v62 = vpop.f32.mrb[13].mxu0  ;;  %v6646_v4 = vrot.slane %v6632_v57, 7 }
 0x14a   : > { %v705_v63 = vadd.f32 %v6601_v26, %v704_v62  ;;  %v5318_v0 = vpop.f32.mrb[14].mxu0  ;;  %v6642_v1 = vrot.slane %v6637_v59, 7  ;;  %5394 = vmatpush3.bf16.msra.mxu0 %v6197_v51  ;;  %v6201_v51 = vld [vmem:[%s7717_s3 + $0x68] sm:$0xff]   ;;  %v6752_v62 = vld [vmem:[%s7717_s3 + $0x200] sm:$0xff]  }
 0x14b   : > { %v716_v2 = vadd.f32 %v5318_v0, %v6601_v26  ;;  %v707_v3 = vpop.f32.mrb[15].mxu0  ;;  %5395 = vmatprep.subr.bf16.mxu0 %v6199_v58  ;;  %v829_v8 = vmax.f32 %v713_v61, 0.0  ;;  %v6204_v61 = vld [vmem:[%s7717_s3 + $0x70] sm:$0xff]  }
 0x14c   : > { %v708_v7 = vadd.f32 %v6601_v26, %v707_v3  ;;  %5363 = vmatprep.mubr.msk.bf16.mxu0 %vm6612_vm1, %v6642_v1  ;;  %5455 = vmatprep.mubr.msk.bf16.mxu1 %vm6612_vm1, %v6642_v1  ;;  %v827_v10 = vmax.f32 %v705_v63, 0.0 }
 0x14d   : > { %v830_v9 = vmax.f32 %v716_v2, 0.0  ;;  %5364 = vmatmul.mubr.msk.bf16.gmra.mrb[44].mxu0 %vm6612_vm1, %v6646_v4  ;;  %5456 = vmatmul.mubr.msk.bf16.vlgmr.msra.gmra.mrb[0].mxu1 %vm6612_vm1, %v6646_v4 }
 0x14e   : > { %v828_v11 = vmax.f32 %v708_v7, 0.0  ;;  %5488 = vmatpush3.bf16.msra.mxu1 %v6592_v20  ;;  %5396 = vmatpush3.bf16.msra.mxu0 %v6199_v58 }
 0x14f   : > { %v6668_v12 = vpack.c.bf16 %v830_v9, %v829_v8  ;;  %5489 = vmatprep.subr.bf16.mxu1 %v6193_v5  ;;  %5397 = vmatprep.subr.bf16.mxu0 %v6200_v6 }
 0x150   : > { %v6676_v15 = vpack.c.bf16 %v828_v11, %v827_v10  ;;  %v5321_v16 = vpop.f32.mrb[16].mxu0  ;;  %v6207_v11 = vld [vmem:[%s7717_s3 + $0x78] sm:$0xff]  }
 0x151   : > { %v729_v17 = vadd.f32 %v5321_v16, %v6601_v26  ;;  %v720_v18 = vpop.f32.mrb[17].mxu0  ;;  %v6685_v24 = vrot.slane %v6668_v12, 7  ;;  %v7015_v44 = vrot.slane %v6668_v12, 1 }
 0x152   : > { %v721_v19 = vadd.f32 %v6601_v26, %v720_v18  ;;  %v5322_v20 = vpop.f32.mrb[18].mxu0  ;;  %v6681_v21 = vrot.slane %v6676_v15, 7  ;;  %5490 = vmatpush3.bf16.msra.mxu1 %v6193_v5  ;;  %5398 = vmatpush3.bf16.msra.mxu0 %v6200_v6 }
 0x153   : > { %v732_v22 = vadd.f32 %v5322_v20, %v6601_v26  ;;  %v723_v23 = vpop.f32.mrb[19].mxu0  ;;  %5491 = vmatprep.subr.bf16.mxu1 %v6194_v13  ;;  %5399 = vmatprep.subr.bf16.mxu0 %v6202_v14  ;;  %v833_v29 = vmax.f32 %v729_v17, 0.0  ;;  %v6787_v20 = vld [vmem:[%s7717_s3 + $0x100] sm:$0xff]  }
 0x154   : > { %v724_v28 = vadd.f32 %v6601_v26, %v723_v23  ;;  %5367 = vmatprep.mubr.msk.bf16.mxu0 %vm6612_vm1, %v6681_v21  ;;  %5459 = vmatprep.mubr.msk.bf16.mxu1 %vm6612_vm1, %v6681_v21  ;;  %v831_v31 = vmax.f32 %v721_v19, 0.0 }
 0x155   : > { %v834_v30 = vmax.f32 %v732_v22, 0.0  ;;  %5368 = vmatmul.mubr.msk.bf16.gmra.mrb[48].mxu0 %vm6612_vm1, %v6685_v24  ;;  %5460 = vmatmul.mubr.msk.bf16.gmra.mrb[4].mxu1 %vm6612_vm1, %v6685_v24 }
 0x156   : > { %v832_v32 = vmax.f32 %v724_v28, 0.0  ;;  %5492 = vmatpush3.bf16.msra.mxu1 %v6194_v13  ;;  %5400 = vmatpush3.bf16.msra.mxu0 %v6202_v14 }
 0x157   : > { %v6706_v33 = vpack.c.bf16 %v834_v30, %v833_v29  ;;  %5493 = vmatprep.subr.bf16.mxu1 %v6195_v25  ;;  %5401 = vmatprep.subr.bf16.mxu0 %v6203_v27 }
 0x158   : > { %v6714_v36 = vpack.c.bf16 %v832_v32, %v831_v31  ;;  %v5325_v37 = vpop.f32.mrb[20].mxu0 }
 0x159   : > { %v745_v38 = vadd.f32 %v5325_v37, %v6601_v26  ;;  %v736_v41 = vpop.f32.mrb[21].mxu0  ;;  %v6723_v50 = vrot.slane %v6706_v33, 7 }
 0x15a   : > { %v737_v42 = vadd.f32 %v6601_v26, %v736_v41  ;;  %v5326_v43 = vpop.f32.mrb[22].mxu0  ;;  %v6719_v45 = vrot.slane %v6714_v36, 7  ;;  %5494 = vmatpush3.bf16.msra.mxu1 %v6195_v25  ;;  %5402 = vmatpush3.bf16.msra.mxu0 %v6203_v27 }
 0x15b   : > { %v748_v46 = vadd.f32 %v5326_v43, %v6601_v26  ;;  %v739_v49 = vpop.f32.mrb[23].mxu0  ;;  %5495 = vmatprep.subr.bf16.mxu1 %v6198_v34  ;;  %5403 = vmatprep.subr.bf16.mxu0 %v6205_v35  ;;  %v837_v54 = vmax.f32 %v745_v38, 0.0 }
 0x15c   : > { %v740_v53 = vadd.f32 %v6601_v26, %v739_v49  ;;  %5371 = vmatprep.mubr.msk.bf16.mxu0 %vm6612_vm1, %v6719_v45  ;;  %5463 = vmatprep.mubr.msk.bf16.mxu1 %vm6612_vm1, %v6719_v45  ;;  %v835_v56 = vmax.f32 %v737_v42, 0.0 }
 0x15d   : > { %v838_v55 = vmax.f32 %v748_v46, 0.0  ;;  %5372 = vmatmul.mubr.msk.bf16.gmra.mrb[52].mxu0 %vm6612_vm1, %v6723_v50  ;;  %5464 = vmatmul.mubr.msk.bf16.gmra.mrb[8].mxu1 %vm6612_vm1, %v6723_v50 }
 0x15e   : > { %v836_v58 = vmax.f32 %v740_v53, 0.0  ;;  %5496 = vmatpush3.bf16.msra.mxu1 %v6198_v34  ;;  %5404 = vmatpush3.bf16.msra.mxu0 %v6205_v35 }
 0x15f   : > { %v6744_v60 = vpack.c.bf16 %v838_v55, %v837_v54  ;;  %5497 = vmatprep.subr.bf16.mxu1 %v6201_v51  ;;  %5405 = vmatprep.subr.bf16.mxu0 %v6206_v52 }
 0x160   : > { %v6754_v63 = vpack.c.bf16 %v836_v58, %v835_v56  ;;  %v5329_v0 = vpop.f32.mrb[24].mxu0 }
 0x161   : > { %v761_v2 = vadd.f32 %v5329_v0, %v6601_v26  ;;  %v752_v3 = vpop.f32.mrb[25].mxu0  ;;  %v6763_v10 = vrot.slane %v6744_v60, 7 }
 0x162   : > { %v753_v5 = vadd.f32 %v6601_v26, %v752_v3  ;;  %v5330_v6 = vpop.f32.mrb[26].mxu0  ;;  %v6759_v7 = vrot.slane %v6754_v63, 7  ;;  %5498 = vmatpush3.bf16.msra.mxu1 %v6201_v51  ;;  %5406 = vmatpush3.bf16.msra.mxu0 %v6206_v52 }
 0x163   : > { %v764_v8 = vadd.f32 %v5330_v6, %v6601_v26  ;;  %v755_v9 = vpop.f32.mrb[27].mxu0  ;;  %5499 = vmatprep.subr.bf16.mxu1 %v6204_v61  ;;  %5727 = vmatprep.subr.bf16.mxu0 %v6752_v62  ;;  %v841_v14 = vmax.f32 %v761_v2, 0.0 }
 0x164   : > { %v756_v13 = vadd.f32 %v6601_v26, %v755_v9  ;;  %5375 = vmatprep.mubr.msk.bf16.mxu0 %vm6612_vm1, %v6759_v7  ;;  %5467 = vmatprep.mubr.msk.bf16.mxu1 %vm6612_vm1, %v6759_v7  ;;  %v839_v17 = vmax.f32 %v753_v5, 0.0 }
 0x165   : > { %v842_v16 = vmax.f32 %v764_v8, 0.0  ;;  %5376 = vmatmul.mubr.msk.bf16.gmra.mrb[56].mxu0 %vm6612_vm1, %v6763_v10  ;;  %5468 = vmatmul.mubr.msk.bf16.gmra.mrb[12].mxu1 %vm6612_vm1, %v6763_v10 }
 0x166   : > { %v840_v18 = vmax.f32 %v756_v13, 0.0  ;;  %5500 = vmatpush3.bf16.msra.mxu1 %v6204_v61 }
 0x167   : > { %v6782_v19 = vpack.c.bf16 %v842_v16, %v841_v14  ;;  %5501 = vmatprep.subr.bf16.mxu1 %v6207_v11  ;;  %v6862_v16 = vld [vmem:[%s7717_s3 + $0x208] sm:$0xff]  }
 0x168   : > { %v6789_v22 = vpack.c.bf16 %v840_v18, %v839_v17  ;;  %v5333_v23 = vpop.f32.mrb[28].mxu0  ;;  %v6878_v17 = vld [vmem:[%s7717_s3 + $0x210] sm:$0xff]   ;;  %v6209_v18 = vld [vmem:[%s7717_s3 + $0x108] sm:$0xff]  }
 0x169   : > { %v777_v25 = vadd.f32 %v5333_v23, %v6601_v26  ;;  %v768_v27 = vpop.f32.mrb[29].mxu0  ;;  %v6798_v34 = vrot.slane %v6782_v19, 7 }
 0x16a   : > { %v769_v28 = vadd.f32 %v6601_v26, %v768_v27  ;;  %v5334_v29 = vpop.f32.mrb[30].mxu0  ;;  %v6794_v30 = vrot.slane %v6789_v22, 7  ;;  %5502 = vmatpush3.bf16.msra.mxu1 %v6207_v11  ;;  %v6306_v11 = vmov 0.0|0.0  }
 0x16b   : > { %v780_v31 = vadd.f32 %v5334_v29, %v6601_v26  ;;  %v771_v32 = vpop.f32.mrb[31].mxu0  ;;  %5535 = vmatprep.subr.bf16.mxu1 %v6787_v20  ;;  %v845_v37 = vmax.f32 %v777_v25, 0.0  ;;  %v1056_v13 = vrot.slane %v6306_v11, 7  ;;  %v6921_v29 = vld [vmem:[%s7717_s3 + $0x228] sm:$0xff]  }
 0x16c   : > { %v772_v35 = vadd.f32 %v6601_v26, %v771_v32  ;;  %5379 = vmatprep.mubr.msk.bf16.mxu0 %vm6612_vm1, %v6794_v30  ;;  %5471 = vmatprep.mubr.msk.bf16.mxu1 %vm6612_vm1, %v6794_v30  ;;  %v843_v41 = vmax.f32 %v769_v28, 0.0  ;;  %v6211_v28 = vld [vmem:[%s7717_s3 + $0x118] sm:$0xff]  }
 0x16d   : > { %v846_v38 = vmax.f32 %v780_v31, 0.0  ;;  %5380 = vmatmul.mubr.msk.bf16.gmra.mrb[60].mxu0 %vm6612_vm1, %v6798_v34  ;;  %5472 = vmatmul.mubr.msk.bf16.gmra.mrb[16].mxu1 %vm6612_vm1, %v6798_v34  ;;  %v6936_v31 = vld [vmem:[%s7717_s3 + $0x230] sm:$0xff]   ;;  %v6949_v32 = vld [vmem:[%s7717_s3 + $0x238] sm:$0xff]  }
 0x16e   : > { %v844_v42 = vmax.f32 %v772_v35, 0.0  ;;  %v6224_v35 = vld [vmem:[%s7717_s3 + $0x1c0] sm:$0xff]  }
 0x16f   : > { %v6814_v43 = vpack.c.bf16 %v846_v38, %v845_v37  ;;  %v6226_v37 = vld [vmem:[%s7717_s3 + $0x1d0] sm:$0xff]   ;;  %v7033_v38 = vrot.slane %v6706_v33, 1 }
 0x170   : > { %v6816_v46 = vpack.c.bf16 %v844_v42, %v843_v41  ;;  %v5337_v49 = vpop.f32.mrb[32].mxu0  ;;  %v7036_v41 = vrot.slane %v6754_v63, 1  ;;  %v6227_v42 = vld [vmem:[%s7717_s3 + $0x1d8] sm:$0xff]  }
 0x171   : > { %v793_v51 = vadd.f32 %v5337_v49, %v6601_v26  ;;  %v784_v52 = vpop.f32.mrb[33].mxu0  ;;  %v6825_v61 = vrot.slane %v6814_v43, 7  ;;  %v6228_v49 = vld [vmem:[%s7717_s3 + $0x1e0] sm:$0xff]  }
 0x172   : > { %v785_v53 = vadd.f32 %v6601_v26, %v784_v52  ;;  %v5338_v54 = vpop.f32.mrb[34].mxu0  ;;  %v6821_v55 = vrot.slane %v6816_v46, 7  ;;  %v7054_v52 = vrot.slane %v6789_v22, 1 }
 0x173   : > { %v796_v56 = vadd.f32 %v5338_v54, %v6601_v26  ;;  %v787_v58 = vpop.f32.mrb[35].mxu0  ;;  %v849_v2 = vmax.f32 %v793_v51, 0.0  ;;  %v7051_v51 = vrot.slane %v6744_v60, 1  ;;  %v6230_v54 = vld [vmem:[%s7717_s3 + $0x1f0] sm:$0xff]  }
 0x174   : > { %v788_v0 = vadd.f32 %v6601_v26, %v787_v58  ;;  %5383 = vmatprep.mubr.msk.bf16.mxu0 %vm6612_vm1, %v6821_v55  ;;  %5475 = vmatprep.mubr.msk.bf16.mxu1 %vm6612_vm1, %v6821_v55  ;;  %v847_v5 = vmax.f32 %v785_v53, 0.0  ;;  %v6229_v53 = vld [vmem:[%s7717_s3 + $0x1e8] sm:$0xff]   ;;  %v6231_v58 = vld [vmem:[%s7717_s3 + $0x1f8] sm:$0xff]  }
 0x175   : > { %v850_v3 = vmax.f32 %v796_v56, 0.0  ;;  %5384 = vmatmul.mubr.msk.bf16.gmra.mrb[64].mxu0 %vm6612_vm1, %v6825_v61  ;;  %5476 = vmatmul.mubr.msk.bf16.gmra.mrb[20].mxu1 %vm6612_vm1, %v6825_v61  ;;  %v7072_v56 = vrot.slane %v6816_v46, 1 }
 0x176   : > { %v848_v26 = vmax.f32 %v788_v0, 0.0  ;;  %v7087_v0 = vrot.slane %v6814_v43, 1 }
 0x177   : > { %v6840_v6 = vpack.c.bf16 %v850_v3, %v849_v2 }
 0x178   : > { %v6842_v8 = vpack.c.bf16 %v848_v26, %v847_v5  ;;  %v5341_v23 = vpop.f32.mrb[36].mxu0  ;;  %v6233_v5 = vld [vmem:[%s7717_s3 + $0x88] sm:$0xff]   ;;  %v6234_v26 = vld [vmem:[%s7717_s3 + $0x90] sm:$0xff]  }
 0x179   : > { %v1073_v14 = vrot.slane %v6840_v6, 7  ;;  %v800_v25 = vpop.f32.mrb[37].mxu0  ;;  %v2638_v3 = vrot.slane %v6840_v6, 1  ;;  %v6251_v23 = vld [vmem:[%s7719_s5 + $0x18] sm:$0xff]  }
 0x17a   : > { %v1072_v9 = vrot.slane %v6842_v8, 7  ;;  %v5342_v27 = vpop.f32.mrb[38].mxu0  ;;  %v2637_v2 = vrot.slane %v6842_v8, 1 }
 0x17c   : > { %5387 = vmatprep.mubr.msk.bf16.mxu0 %vm6612_vm1, %v1072_v9  ;;  %5479 = vmatprep.mubr.msk.bf16.mxu1 %vm6612_vm1, %v1072_v9  ;;  %v2624_v9 = vrot.slane %v6607_v39, 1 }
 0x17d   : > { %5388 = vmatmul.mubr.msk.bf16.gmra.mrb[68].mxu0 %vm6612_vm1, %v1073_v14  ;;  %5480 = vmatmul.mubr.msk.bf16.gmra.mrb[24].mxu1 %vm6612_vm1, %v1073_v14  ;;  %v6244_v14 = vld [vmem:[%s7717_s3 + $0x160] sm:$0xff]  }
 0x17e   : > { %5407 = vmatprep.mubr.msk.bf16.mxu0 %vm6612_vm1, %v1056_v13  ;;  %5483 = vmatprep.mubr.msk.bf16.mxu1 %vm6612_vm1, %v1056_v13 }
 0x185   : > { %5408 = vmatmul.mubr.msk.bf16.vlgmr.msra.gmra.mrb[40].mxu0 %vm6612_vm1, %v1056_v13  ;;  %5484 = vmatmul.mubr.msk.bf16.gmra.mrb[28].mxu1 %vm6612_vm1, %v1056_v13  ;;  %v6250_v13 = vld [vmem:[%s7719_s5 + $0x10] sm:$0xff]  }
 0x186   : > { %5411 = vmatprep.mubr.msk.bf16.mxu0 %vm6612_vm1, %v1058_v47  ;;  %5503 = vmatprep.mubr.bf16.mxu1 %v6306_v11  ;;  %v6893_v47 = vld [vmem:[%s7717_s3 + $0x218] sm:$0xff]  }
 0x187   : > { %5728 = vmatpush3.bf16.msra.mxu0 %v6752_v62 }
 0x188   : > { %5729 = vmatprep.subr.bf16.mxu0 %v6862_v16 }
 0x18b   : > { %5730 = vmatpush3.bf16.msra.mxu0 %v6862_v16 }
 0x18c   : > { %5731 = vmatprep.subr.bf16.mxu0 %v6878_v17 }
 0x18d   : > { %5412 = vmatmul.mubr.msk.bf16.gmra.mrb[44].mxu0 %vm6612_vm1, %v1059_v48  ;;  %5504 = vmatmul.mubr.bf16.vlgmr.msra.gmra.mrb[0].mxu1 %v6306_v11  ;;  %v6210_v48 = vld [vmem:[%s7717_s3 + $0x110] sm:$0xff]  }
 0x18e   : > { %5536 = vmatpush3.bf16.msra.mxu1 %v6787_v20  ;;  %5415 = vmatprep.mubr.msk.bf16.mxu0 %vm6612_vm1, %v6642_v1  ;;  %v6908_v1 = vld [vmem:[%s7717_s3 + $0x220] sm:$0xff]   ;;  %v803_v20 = vpop.f32.mrb[39].mxu0 }
 0x18f   : > { %5507 = vmatprep.mubr.bf16.mxu1 %v6609_v40  ;;  %5537 = vmatprep.subr.bf16.mxu1 %v6209_v18  ;;  %v6245_v20 = vld [vmem:[%s7717_s3 + $0x168] sm:$0xff]  }
 0x190   : > { %5732 = vmatpush3.bf16.msra.mxu0 %v6878_v17 }
 0x191   : > { %5733 = vmatprep.subr.bf16.mxu0 %v6893_v47 }
 0x192   : > { %5538 = vmatpush3.bf16.msra.mxu1 %v6209_v18 }
 0x193   : > { %5539 = vmatprep.subr.bf16.mxu1 %v6210_v48 }
 0x194   : > { %5734 = vmatpush3.bf16.msra.mxu0 %v6893_v47 }
 0x195   : > { %5416 = vmatmul.mubr.msk.bf16.gmra.mrb[48].mxu0 %vm6612_vm1, %v6646_v4  ;;  %5508 = vmatmul.mubr.bf16.gmra.mrb[4].mxu1 %v6607_v39  ;;  %v6214_v4 = vld [vmem:[%s7717_s3 + $0x120] sm:$0xff]  }
 0x196   : > { %5419 = vmatprep.mubr.msk.bf16.mxu0 %vm6612_vm1, %v6681_v21  ;;  %5511 = vmatprep.mubr.bf16.mxu1 %v6637_v59  ;;  %v6217_v21 = vld [vmem:[%s7717_s3 + $0x128] sm:$0xff]  }
 0x197   : > { %5540 = vmatpush3.bf16.msra.mxu1 %v6210_v48  ;;  %5735 = vmatprep.subr.bf16.mxu0 %v6908_v1 }
 0x198   : > { %5541 = vmatprep.subr.bf16.mxu1 %v6211_v28  ;;  %5736 = vmatpush3.bf16.msra.mxu0 %v6908_v1 }
 0x199   : > { %5737 = vmatprep.subr.bf16.mxu0 %v6921_v29 }
 0x19b   : > { %5542 = vmatpush3.bf16.msra.mxu1 %v6211_v28  ;;  %v6252_v28 = vld [vmem:[%s7719_s5 + $0x20] sm:$0xff]  }
 0x19c   : > { %5543 = vmatprep.subr.bf16.mxu1 %v6214_v4  ;;  %5738 = vmatpush3.bf16.msra.mxu0 %v6921_v29 }
 0x19d   : > { %5420 = vmatmul.mubr.msk.bf16.gmra.mrb[52].mxu0 %vm6612_vm1, %v6685_v24  ;;  %5512 = vmatmul.mubr.bf16.gmra.mrb[8].mxu1 %v6632_v57  ;;  %v6220_v24 = vld [vmem:[%s7717_s3 + $0x130] sm:$0xff]  }
 0x19e   : > { %5423 = vmatprep.mubr.msk.bf16.mxu0 %vm6612_vm1, %v6719_v45  ;;  %5515 = vmatprep.mubr.bf16.mxu1 %v6676_v15  ;;  %v6223_v45 = vld [vmem:[%s7717_s3 + $0x138] sm:$0xff]  }
 0x19f   : > { %5544 = vmatpush3.bf16.msra.mxu1 %v6214_v4  ;;  %5739 = vmatprep.subr.bf16.mxu0 %v6936_v31  ;;  %v6246_v4 = vld [vmem:[%s7717_s3 + $0x170] sm:$0xff]  }
 0x1a0   : > { %5545 = vmatprep.subr.bf16.mxu1 %v6217_v21  ;;  %5740 = vmatpush3.bf16.msra.mxu0 %v6936_v31 }
 0x1a1   : > { %5741 = vmatprep.subr.bf16.mxu0 %v6949_v32 }
 0x1a3   : > { %5546 = vmatpush3.bf16.msra.mxu1 %v6217_v21 }
 0x1a4   : > { %5547 = vmatprep.subr.bf16.mxu1 %v6220_v24  ;;  %5742 = vmatpush3.bf16.msra.mxu0 %v6949_v32 }
 0x1a5   : > { %5424 = vmatmul.mubr.msk.bf16.gmra.mrb[56].mxu0 %vm6612_vm1, %v6723_v50  ;;  %5516 = vmatmul.mubr.bf16.gmra.mrb[12].mxu1 %v6668_v12  ;;  %v6993_v50 = vrot.slane %v6637_v59, 1 }
 0x1a6   : > { %5427 = vmatprep.mubr.msk.bf16.mxu0 %vm6612_vm1, %v6759_v7  ;;  %5519 = vmatprep.mubr.bf16.mxu1 %v6714_v36  ;;  %v7003_v7 = vrot.slane %v6632_v57, 1 }
 0x1a7   : > { %5548 = vmatpush3.bf16.msra.mxu1 %v6220_v24 }
 0x1a8   : > { %5549 = vmatprep.subr.bf16.mxu1 %v6223_v45 }
 0x1ab   : > { %5550 = vmatpush3.bf16.msra.mxu1 %v6223_v45 }
 0x1ac   : > { %5583 = vmatprep.subr.bf16.mxu1 %v6224_v35 }
 0x1ad   : > { %5428 = vmatmul.mubr.msk.bf16.gmra.mrb[60].mxu0 %vm6612_vm1, %v6763_v10  ;;  %5520 = vmatmul.mubr.bf16.gmra.mrb[16].mxu1 %v6706_v33  ;;  %v7006_v10 = vrot.slane %v6676_v15, 1 }
 0x1ae   : > { %5431 = vmatprep.mubr.msk.bf16.mxu0 %vm6612_vm1, %v6794_v30  ;;  %5523 = vmatprep.mubr.bf16.mxu1 %v6754_v63  ;;  %v6225_v30 = vld [vmem:[%s7717_s3 + $0x1c8] sm:$0xff]  }
 0x1b5   : > { %5432 = vmatmul.mubr.msk.bf16.gmra.mrb[64].mxu0 %vm6612_vm1, %v6798_v34  ;;  %5524 = vmatmul.mubr.bf16.gmra.mrb[20].mxu1 %v6744_v60  ;;  %v7024_v34 = vrot.slane %v6714_v36, 1 }
 0x1b6   : > { %5435 = vmatprep.mubr.msk.bf16.mxu0 %vm6612_vm1, %v6821_v55  ;;  %5527 = vmatprep.mubr.bf16.mxu1 %v6789_v22  ;;  %v7069_v55 = vrot.slane %v6782_v19, 1 }
 0x1bd   : > { %5436 = vmatmul.mubr.msk.bf16.gmra.mrb[68].mxu0 %vm6612_vm1, %v6825_v61  ;;  %5528 = vmatmul.mubr.bf16.gmra.mrb[24].mxu1 %v6782_v19  ;;  %v6232_v61 = vld [vmem:[%s7717_s3 + $0x80] sm:$0xff]  }
 0x1be   : > { %5531 = vmatprep.mubr.bf16.mxu1 %v6816_v46  ;;  %5743 = vmatprep.mubr.msk.bf16.mxu0 %vm2641_vm2, %v6993_v50 }
 0x1c5   : > { %5532 = vmatmul.mubr.bf16.gmra.mrb[28].mxu1 %v6814_v43  ;;  %5744 = vmatmul.mubr.msk.bf16.vlgmr.msra.gmra.mrb[72].mxu0 %vm2641_vm2, %v7003_v7 }
 0x1c6   : > { %5551 = vmatprep.mubr.bf16.mxu1 %v6609_v40  ;;  %5747 = vmatprep.mubr.msk.bf16.mxu0 %vm2641_vm2, %v7006_v10 }
 0x1cd   : > { %5552 = vmatmul.mubr.bf16.vlgmr.msra.gmra.mrb[0].mxu1 %v6607_v39  ;;  %5748 = vmatmul.mubr.msk.bf16.gmra.mrb[76].mxu0 %vm2641_vm2, %v7015_v44 }
 0x1ce   : > { %5584 = vmatpush3.bf16.msra.mxu1 %v6224_v35  ;;  %5555 = vmatprep.mubr.bf16.mxu1 %v6637_v59 }
 0x1cf   : > { %5751 = vmatprep.mubr.msk.bf16.mxu0 %vm2641_vm2, %v7024_v34  ;;  %5585 = vmatprep.subr.bf16.mxu1 %v6225_v30 }
 0x1d2   : > { %5586 = vmatpush3.bf16.msra.mxu1 %v6225_v30  ;;  %v6247_v30 = vld [vmem:[%s7717_s3 + $0x178] sm:$0xff]  }
 0x1d3   : > { %5587 = vmatprep.subr.bf16.mxu1 %v6226_v37 }
 0x1d5   : > { %5556 = vmatmul.mubr.bf16.gmra.mrb[4].mxu1 %v6632_v57  ;;  %5752 = vmatmul.mubr.msk.bf16.gmra.mrb[80].mxu0 %vm2641_vm2, %v7033_v38 }
 0x1d6   : > { %5559 = vmatprep.mubr.bf16.mxu1 %v6676_v15  ;;  %5755 = vmatprep.mubr.msk.bf16.mxu0 %vm2641_vm2, %v7036_v41 }
 0x1d7   : > { %5588 = vmatpush3.bf16.msra.mxu1 %v6226_v37 }
 0x1d8   : > { %5589 = vmatprep.subr.bf16.mxu1 %v6227_v42 }
 0x1db   : > { %5590 = vmatpush3.bf16.msra.mxu1 %v6227_v42 }
 0x1dc   : > { %5591 = vmatprep.subr.bf16.mxu1 %v6228_v49 }
 0x1dd   : > { %5560 = vmatmul.mubr.bf16.gmra.mrb[8].mxu1 %v6668_v12  ;;  %5756 = vmatmul.mubr.msk.bf16.gmra.mrb[84].mxu0 %vm2641_vm2, %v7051_v51 }
 0x1de   : > { %5563 = vmatprep.mubr.bf16.mxu1 %v6714_v36  ;;  %5759 = vmatprep.mubr.msk.bf16.mxu0 %vm2641_vm2, %v7054_v52 }
 0x1df   : > { %5592 = vmatpush3.bf16.msra.mxu1 %v6228_v49 }
 0x1e0   : > { %5593 = vmatprep.subr.bf16.mxu1 %v6229_v53 }
 0x1e3   : > { %5594 = vmatpush3.bf16.msra.mxu1 %v6229_v53 }
 0x1e4   : > { %5595 = vmatprep.subr.bf16.mxu1 %v6230_v54 }
 0x1e5   : > { %5564 = vmatmul.mubr.bf16.gmra.mrb[12].mxu1 %v6706_v33  ;;  %5760 = vmatmul.mubr.msk.bf16.gmra.mrb[88].mxu0 %vm2641_vm2, %v7069_v55 }
 0x1e6   : > { %5567 = vmatprep.mubr.bf16.mxu1 %v6754_v63  ;;  %5763 = vmatprep.mubr.msk.bf16.mxu0 %vm2641_vm2, %v7072_v56 }
 0x1e7   : > { %5596 = vmatpush3.bf16.msra.mxu1 %v6230_v54 }
 0x1e8   : > { %5597 = vmatprep.subr.bf16.mxu1 %v6231_v58 }
 0x1eb   : > { %5598 = vmatpush3.bf16.msra.mxu1 %v6231_v58 }
 0x1ec   : > { %5631 = vmatprep.subr.bf16.mxu1 %v6232_v61 }
 0x1ed   : > { %5568 = vmatmul.mubr.bf16.gmra.mrb[16].mxu1 %v6744_v60  ;;  %5764 = vmatmul.mubr.msk.bf16.gmra.mrb[92].mxu0 %vm2641_vm2, %v7087_v0 }
 0x1ee   : > { %5571 = vmatprep.mubr.bf16.mxu1 %v6789_v22  ;;  %5767 = vmatprep.mubr.msk.bf16.mxu0 %vm2641_vm2, %v2637_v2 }
 0x1f5   : > { %5572 = vmatmul.mubr.bf16.gmra.mrb[20].mxu1 %v6782_v19  ;;  %5768 = vmatmul.mubr.msk.bf16.gmra.mrb[96].mxu0 %vm2641_vm2, %v2638_v3 }
 0x1f6   : > { %5575 = vmatprep.mubr.bf16.mxu1 %v6816_v46 }
 0x1fd   : > { %5576 = vmatmul.mubr.bf16.gmra.mrb[24].mxu1 %v6814_v43 }
 0x1fe   : > { %5579 = vmatprep.mubr.bf16.mxu1 %v6842_v8 }
 0x205   : > { %5580 = vmatmul.mubr.bf16.gmra.mrb[28].mxu1 %v6840_v6 }
 0x206   : > { %5599 = vmatprep.mubr.bf16.mxu1 %v6637_v59  ;;  %v6235_v59 = vld [vmem:[%s7717_s3 + $0x98] sm:$0xff]  }
 0x20d   : > { %5600 = vmatmul.mubr.bf16.vlgmr.msra.gmra.mrb[0].mxu1 %v6632_v57  ;;  %v6236_v57 = vld [vmem:[%s7717_s3 + $0xa0] sm:$0xff]  }
 0x20e   : > { %5632 = vmatpush3.bf16.msra.mxu1 %v6232_v61  ;;  %5603 = vmatprep.mubr.bf16.mxu1 %v6676_v15  ;;  %v6237_v15 = vld [vmem:[%s7717_s3 + $0xa8] sm:$0xff]  }
 0x20f   : > { %5633 = vmatprep.subr.bf16.mxu1 %v6233_v5 }
 0x212   : > { %5634 = vmatpush3.bf16.msra.mxu1 %v6233_v5 }
 0x213   : > { %5635 = vmatprep.subr.bf16.mxu1 %v6234_v26 }
 0x215   : > { %5604 = vmatmul.mubr.bf16.gmra.mrb[4].mxu1 %v6668_v12  ;;  %v6238_v12 = vld [vmem:[%s7717_s3 + $0xb0] sm:$0xff]  }
 0x216   : > { %5607 = vmatprep.mubr.bf16.mxu1 %v6714_v36  ;;  %5636 = vmatpush3.bf16.msra.mxu1 %v6234_v26  ;;  %v6239_v36 = vld [vmem:[%s7717_s3 + $0xb8] sm:$0xff]  }
 0x217   : > { %5637 = vmatprep.subr.bf16.mxu1 %v6235_v59 }
 0x21a   : > { %5638 = vmatpush3.bf16.msra.mxu1 %v6235_v59 }
 0x21b   : > { %5639 = vmatprep.subr.bf16.mxu1 %v6236_v57 }
 0x21d   : > { %5608 = vmatmul.mubr.bf16.gmra.mrb[8].mxu1 %v6706_v33  ;;  %v6240_v33 = vld [vmem:[%s7717_s3 + $0x140] sm:$0xff]  }
 0x21e   : > { %5611 = vmatprep.mubr.bf16.mxu1 %v6754_v63  ;;  %5640 = vmatpush3.bf16.msra.mxu1 %v6236_v57  ;;  %v6241_v63 = vld [vmem:[%s7717_s3 + $0x148] sm:$0xff]  }
 0x21f   : > { %5641 = vmatprep.subr.bf16.mxu1 %v6237_v15 }
 0x222   : > { %5642 = vmatpush3.bf16.msra.mxu1 %v6237_v15 }
 0x223   : > { %5643 = vmatprep.subr.bf16.mxu1 %v6238_v12 }
 0x225   : > { %5612 = vmatmul.mubr.bf16.gmra.mrb[12].mxu1 %v6744_v60  ;;  %v7146_v60 = vrot.slane %v6306_v11, 1 }
 0x226   : > { %5615 = vmatprep.mubr.bf16.mxu1 %v6789_v22  ;;  %5644 = vmatpush3.bf16.msra.mxu1 %v6238_v12  ;;  %v6242_v22 = vld [vmem:[%s7717_s3 + $0x150] sm:$0xff]  }
 0x227   : > { %5645 = vmatprep.subr.bf16.mxu1 %v6239_v36 }
 0x22a   : > { %5646 = vmatpush3.bf16.msra.mxu1 %v6239_v36 }
 0x22b   : > { %5679 = vmatprep.subr.bf16.mxu1 %v6240_v33 }
 0x22d   : > { %5616 = vmatmul.mubr.bf16.gmra.mrb[16].mxu1 %v6782_v19  ;;  %v2623_v19 = vrot.slane %v6609_v40, 1 }
 0x22e   : > { %5619 = vmatprep.mubr.bf16.mxu1 %v6816_v46  ;;  %v6249_v46 = vld [vmem:[%s7719_s5 + $0x8] sm:$0xff]  }
 0x235   : > { %5620 = vmatmul.mubr.bf16.gmra.mrb[20].mxu1 %v6814_v43  ;;  %v6248_v43 = vld [vmem:[%s7719_s5] sm:$0xff]  }
 0x236   : > { %5623 = vmatprep.mubr.bf16.mxu1 %v6842_v8  ;;  %5775 = vmatprep.subr.bf16.mxu0 %v6248_v43 }
 0x237   : > { %5776 = vmatpush3.bf16.msra.mxu0 %v6248_v43 }
 0x238   : > { %5777 = vmatprep.subr.bf16.mxu0 %v6249_v46 }
 0x23b   : > { %5778 = vmatpush3.bf16.msra.mxu0 %v6249_v46 }
 0x23c   : > { %5779 = vmatprep.subr.bf16.mxu0 %v6250_v13 }
 0x23d   : > { %5624 = vmatmul.mubr.bf16.gmra.mrb[24].mxu1 %v6840_v6  ;;  %v6253_v6 = vld [vmem:[%s7719_s5 + $0x28] sm:$0xff]  }
 0x23e   : > { %5627 = vmatprep.mubr.bf16.mxu1 %v6306_v11 }
 0x23f   : > { %5780 = vmatpush3.bf16.msra.mxu0 %v6250_v13 }
 0x240   : > { %5781 = vmatprep.subr.bf16.mxu0 %v6251_v23 }
 0x243   : > { %5782 = vmatpush3.bf16.msra.mxu0 %v6251_v23 }
 0x244   : > { %5783 = vmatprep.subr.bf16.mxu0 %v6252_v28 }
 0x245   : > { %5628 = vmatmul.mubr.bf16.gmra.mrb[28].mxu1 %v6306_v11  ;;  %v6243_v11 = vld [vmem:[%s7717_s3 + $0x158] sm:$0xff]  }
 0x246   : > { %5647 = vmatprep.mubr.msk.bf16.mxu1 %vm2641_vm2, %v7146_v60 }
 0x247   : > { %5784 = vmatpush3.bf16.msra.mxu0 %v6252_v28 }
 0x248   : > { %5785 = vmatprep.subr.bf16.mxu0 %v6253_v6 }
 0x24b   : > { %5786 = vmatpush3.bf16.msra.mxu0 %v6253_v6 }
 0x24d   : > { %5648 = vmatmul.mubr.msk.bf16.vlgmr.msra.gmra.mrb[0].mxu1 %vm2641_vm2, %v7146_v60 }
 0x24e   : > { %5680 = vmatpush3.bf16.msra.mxu1 %v6240_v33  ;;  %5651 = vmatprep.mubr.msk.bf16.mxu1 %vm2641_vm2, %v2623_v19 }
 0x24f   : > { %5681 = vmatprep.subr.bf16.mxu1 %v6241_v63 }
 0x252   : > { %5682 = vmatpush3.bf16.msra.mxu1 %v6241_v63 }
 0x253   : > { %5683 = vmatprep.subr.bf16.mxu1 %v6242_v22 }
 0x255   : > { %5652 = vmatmul.mubr.msk.bf16.gmra.mrb[4].mxu1 %vm2641_vm2, %v2624_v9 }
 0x256   : > { %5655 = vmatprep.mubr.msk.bf16.mxu1 %vm2641_vm2, %v6993_v50  ;;  %5684 = vmatpush3.bf16.msra.mxu1 %v6242_v22 }
 0x257   : > { %5685 = vmatprep.subr.bf16.mxu1 %v6243_v11 }
 0x258   : > { %v7184_v18 = vpop.f32.mrb[40].mxu0 }
 0x259   : > { %v7186_v48 = vpop.f32.mrb[41].mxu0 }
 0x25a   : > { %v7191_v25 = vpop.f32.mrb[42].mxu0  ;;  %5686 = vmatpush3.bf16.msra.mxu1 %v6243_v11 }
 0x25b   : > { %v7193_v27 = vpop.f32.mrb[43].mxu0  ;;  %5687 = vmatprep.subr.bf16.mxu1 %v6244_v14 }
 0x25d   : > { %5656 = vmatmul.mubr.msk.bf16.gmra.mrb[8].mxu1 %vm2641_vm2, %v7003_v7 }
 0x25e   : > { %5659 = vmatprep.mubr.msk.bf16.mxu1 %vm2641_vm2, %v7006_v10  ;;  %5688 = vmatpush3.bf16.msra.mxu1 %v6244_v14 }
 0x25f   : > { %5689 = vmatprep.subr.bf16.mxu1 %v6245_v20 }
 0x260   : > { %v7208_v21 = vpop.f32.mrb[44].mxu0 }
 0x261   : > { %v7210_v24 = vpop.f32.mrb[45].mxu0 }
 0x262   : > { %v7212_v45 = vpop.f32.mrb[46].mxu0  ;;  %5690 = vmatpush3.bf16.msra.mxu1 %v6245_v20 }
 0x263   : > { %v7214_v35 = vpop.f32.mrb[47].mxu0  ;;  %5691 = vmatprep.subr.bf16.mxu1 %v6246_v4 }
 0x265   : > { %5660 = vmatmul.mubr.msk.bf16.gmra.mrb[12].mxu1 %vm2641_vm2, %v7015_v44 }
 0x266   : > { %5663 = vmatprep.mubr.msk.bf16.mxu1 %vm2641_vm2, %v7024_v34  ;;  %5692 = vmatpush3.bf16.msra.mxu1 %v6246_v4 }
 0x267   : > { %5693 = vmatprep.subr.bf16.mxu1 %v6247_v30 }
 0x268   : > { %v7223_v37 = vpop.f32.mrb[48].mxu0 }
 0x269   : > { %v7225_v42 = vpop.f32.mrb[49].mxu0 }
 0x26a   : > { %v7227_v49 = vpop.f32.mrb[50].mxu0  ;;  %5694 = vmatpush3.bf16.msra.mxu1 %v6247_v30  ;;  %v6255_v30 = vld [vmem:[%s7719_s5 + $0x38] sm:$0xff]  }
 0x26b   : > { %v7229_v53 = vpop.f32.mrb[51].mxu0  ;;  %5871 = vmatprep.subr.bf16.mxu1 %v6752_v62 }
 0x26d   : > { %5664 = vmatmul.mubr.msk.bf16.gmra.mrb[16].mxu1 %vm2641_vm2, %v7033_v38 }
 0x26e   : > { %5667 = vmatprep.mubr.msk.bf16.mxu1 %vm2641_vm2, %v7036_v41 }
 0x270   : > { %v7236_v54 = vpop.f32.mrb[52].mxu0 }
 0x271   : > { %v7238_v58 = vpop.f32.mrb[53].mxu0 }
 0x272   : > { %v7240_v61 = vpop.f32.mrb[54].mxu0 }
 0x273   : > { %v7242_v5 = vpop.f32.mrb[55].mxu0 }
 0x275   : > { %5668 = vmatmul.mubr.msk.bf16.gmra.mrb[20].mxu1 %vm2641_vm2, %v7051_v51 }
 0x276   : > { %5671 = vmatprep.mubr.msk.bf16.mxu1 %vm2641_vm2, %v7054_v52 }
 0x278   : > { %v7248_v26 = vpop.f32.mrb[56].mxu0 }
 0x279   : > { %v7250_v59 = vpop.f32.mrb[57].mxu0 }
 0x27a   : > { %v7252_v57 = vpop.f32.mrb[58].mxu0 }
 0x27b   : > { %v7254_v15 = vpop.f32.mrb[59].mxu0 }
 0x27d   : > { %5672 = vmatmul.mubr.msk.bf16.gmra.mrb[24].mxu1 %vm2641_vm2, %v7069_v55 }
 0x27e   : > { %5675 = vmatprep.mubr.msk.bf16.mxu1 %vm2641_vm2, %v7072_v56 }
 0x280   : > { %v7260_v12 = vpop.f32.mrb[60].mxu0 }
 0x281   : > { %v7262_v36 = vpop.f32.mrb[61].mxu0 }
 0x282   : > { %v7264_v33 = vpop.f32.mrb[62].mxu0 }
 0x283   : > { %v7266_v63 = vpop.f32.mrb[63].mxu0 }
 0x285   : > { %5676 = vmatmul.mubr.msk.bf16.gmra.mrb[28].mxu1 %vm2641_vm2, %v7087_v0 }
 0x286   : > { %5695 = vmatprep.mubr.msk.bf16.mxu1 %vm2641_vm2, %v2623_v19 }
 0x288   : > { %v7273_v22 = vpop.f32.mrb[64].mxu0 }
 0x289   : > { %v7275_v43 = vpop.f32.mrb[65].mxu0 }
 0x28a   : > { %v7277_v46 = vpop.f32.mrb[66].mxu0 }
 0x28b   : > { %7726 = vst [vmem:[#allocation7_spill] sm:$0xff] %v7277_v46  ;;  %v7279_v11 = vpop.f32.mrb[67].mxu0 }
 0x28c   : > { %7727 = vst [vmem:[#allocation8_spill] sm:$0xff] %v7279_v11 }
 0x28d   : > { %5696 = vmatmul.mubr.msk.bf16.vlgmr.msra.gmra.mrb[0].mxu1 %vm2641_vm2, %v2624_v9 }
 0x28e   : > { %5879 = vmatpush3.bf16.msra.mxu1 %v6752_v62  ;;  %5699 = vmatprep.mubr.msk.bf16.mxu1 %vm2641_vm2, %v6993_v50 }
 0x28f   : > { %5872 = vmatprep.subr.bf16.mxu1 %v6862_v16 }
 0x290   : > { %v7288_v40 = vpop.f32.mrb[68].mxu0 }
 0x291   : > { %7728 = vst [vmem:[#allocation9_spill] sm:$0xff] %v7288_v40  ;;  %v7290_v19 = vpop.f32.mrb[69].mxu0 }
 0x292   : > { %7729 = vst [vmem:[#allocation10_spill] sm:$0xff] %v7290_v19  ;;  %v7292_v13 = vpop.f32.mrb[70].mxu0  ;;  %5880 = vmatpush3.bf16.msra.mxu1 %v6862_v16  ;;  %v7413_v19 = vld [vmem:[%s7718_s4] ss:$0 sm:$0xff] }
 0x293   : > { %7730 = vst [vmem:[#allocation11_spill] sm:$0xff] %v7292_v13  ;;  %v7295_v14 = vpop.f32.mrb[71].mxu0  ;;  %5873 = vmatprep.subr.bf16.mxu1 %v6878_v17 }
 0x294   : > { %7731 = vst [vmem:[#allocation12_spill] sm:$0xff] %v7295_v14 }
 0x295   : > { %5700 = vmatmul.mubr.msk.bf16.gmra.mrb[4].mxu1 %vm2641_vm2, %v7003_v7 }
 0x296   : > { %5703 = vmatprep.mubr.msk.bf16.mxu1 %vm2641_vm2, %v7006_v10  ;;  %5881 = vmatpush3.bf16.msra.mxu1 %v6878_v17 }
 0x297   : > { %5874 = vmatprep.subr.bf16.mxu1 %v6893_v47 }
 0x298   : > { %v7304_v39 = vpop.f32.mrb[72].mxu0 }
 0x299   : > { %v7306_v62 = vpop.f32.mrb[73].mxu0 }
 0x29a   : > { %v7308_v50 = vpop.f32.mrb[74].mxu0  ;;  %5882 = vmatpush3.bf16.msra.mxu1 %v6893_v47 }
 0x29b   : > { %v7311_v16 = vpop.f32.mrb[75].mxu0  ;;  %5875 = vmatprep.subr.bf16.mxu1 %v6908_v1 }
 0x29d   : > { %5704 = vmatmul.mubr.msk.bf16.gmra.mrb[8].mxu1 %vm2641_vm2, %v7015_v44 }
 0x29e   : > { %5707 = vmatprep.mubr.msk.bf16.mxu1 %vm2641_vm2, %v7024_v34  ;;  %5883 = vmatpush3.bf16.msra.mxu1 %v6908_v1 }
 0x29f   : > { %5876 = vmatprep.subr.bf16.mxu1 %v6921_v29 }
 0x2a0   : > { %v7320_v17 = vpop.f32.mrb[76].mxu0 }
 0x2a1   : > { %v7322_v7 = vpop.f32.mrb[77].mxu0 }
 0x2a2   : > { %v7324_v10 = vpop.f32.mrb[78].mxu0  ;;  %5884 = vmatpush3.bf16.msra.mxu1 %v6921_v29 }
 0x2a3   : > { %v7327_v47 = vpop.f32.mrb[79].mxu0  ;;  %5877 = vmatprep.subr.bf16.mxu1 %v6936_v31 }
 0x2a5   : > { %5708 = vmatmul.mubr.msk.bf16.gmra.mrb[12].mxu1 %vm2641_vm2, %v7033_v38 }
 0x2a6   : > { %5711 = vmatprep.mubr.msk.bf16.mxu1 %vm2641_vm2, %v7036_v41  ;;  %5885 = vmatpush3.bf16.msra.mxu1 %v6936_v31 }
 0x2a7   : > { %5878 = vmatprep.subr.bf16.mxu1 %v6949_v32 }
 0x2a8   : > { %v7336_v1 = vpop.f32.mrb[80].mxu0 }
 0x2a9   : > { %v7338_v44 = vpop.f32.mrb[81].mxu0 }
 0x2aa   : > { %v7340_v34 = vpop.f32.mrb[82].mxu0  ;;  %5886 = vmatpush3.bf16.msra.mxu1 %v6949_v32 }
 0x2ab   : > { %v7343_v29 = vpop.f32.mrb[83].mxu0 }
 0x2ad   : > { %5712 = vmatmul.mubr.msk.bf16.gmra.mrb[16].mxu1 %vm2641_vm2, %v7051_v51 }
 0x2ae   : > { %5715 = vmatprep.mubr.msk.bf16.mxu1 %vm2641_vm2, %v7054_v52 }
 0x2b0   : > { %v7349_v38 = vpop.f32.mrb[84].mxu0 }
 0x2b1   : > { %v7351_v31 = vpop.f32.mrb[85].mxu0 }
 0x2b2   : > { %v7353_v41 = vpop.f32.mrb[86].mxu0 }
 0x2b3   : > { %v7355_v9 = vpop.f32.mrb[87].mxu0 }
 0x2b5   : > { %5716 = vmatmul.mubr.msk.bf16.gmra.mrb[20].mxu1 %vm2641_vm2, %v7069_v55 }
 0x2b6   : > { %5719 = vmatprep.mubr.msk.bf16.mxu1 %vm2641_vm2, %v7072_v56 }
 0x2b8   : > { %v7361_v32 = vpop.f32.mrb[88].mxu0 }
 0x2b9   : > { %v7363_v51 = vpop.f32.mrb[89].mxu0 }
 0x2ba   : > { %v7365_v23 = vpop.f32.mrb[90].mxu0 }
 0x2bb   : > { %v7367_v52 = vpop.f32.mrb[91].mxu0 }
 0x2bd   : > { %5720 = vmatmul.mubr.msk.bf16.gmra.mrb[24].mxu1 %vm2641_vm2, %v7087_v0 }
 0x2be   : > { %5723 = vmatprep.mubr.msk.bf16.mxu1 %vm2641_vm2, %v2637_v2 }
 0x2c0   : > { %v7374_v20 = vpop.f32.mrb[92].mxu0 }
 0x2c1   : > { %v7376_v55 = vpop.f32.mrb[93].mxu0 }
 0x2c2   : > { %v7378_v56 = vpop.f32.mrb[94].mxu0 }
 0x2c3   : > { %v7380_v28 = vpop.f32.mrb[95].mxu0 }
 0x2c5   : > { %5724 = vmatmul.mubr.msk.bf16.gmra.mrb[28].mxu1 %vm2641_vm2, %v2638_v3  ;;  %v6254_v3 = vld [vmem:[%s7719_s5 + $0x30] sm:$0xff]  }
 0x2c6   : > { %5771 = vmatprep.mubr.msk.bf16.mxu1 %vm2641_vm2, %v7146_v60  ;;  %5787 = vmatprep.subr.bf16.mxu0 %v6254_v3 }
 0x2c7   : > { %5788 = vmatpush3.bf16.msra.mxu0 %v6254_v3 }
 0x2c8   : > { %v7387_v0 = vpop.f32.mrb[96].mxu0  ;;  %5789 = vmatprep.subr.bf16.mxu0 %v6255_v30 }
 0x2c9   : > { %7732 = vst [vmem:[#allocation13_spill] sm:$0xff] %v7387_v0  ;;  %v7389_v8 = vpop.f32.mrb[97].mxu0 }
 0x2ca   : > { %7733 = vst [vmem:[#allocation14_spill] sm:$0xff] %v7389_v8  ;;  %v7391_v2 = vpop.f32.mrb[98].mxu0 }
 0x2cb   : > { %7734 = vst [vmem:[#allocation15_spill] sm:$0xff] %v7391_v2  ;;  %v7393_v4 = vpop.f32.mrb[99].mxu0  ;;  %5790 = vmatpush3.bf16.msra.mxu0 %v6255_v30 }
 0x2cc   : > { %7735 = vst [vmem:[#allocation16_spill] sm:$0xff] %v7393_v4 }
 0x2d1   : > { %5772 = vmatmul.mubr.msk.bf16.vlgmr.msra.gmra.mrb[28].mxu1 %vm2641_vm2, %v7146_v60  ;;  %v6256_v60 = vld [vmem:[%s7721_s7] sm:$0xff]  }
 0x2d2   : > { %5823 = vmatprep.subr.bf16.mxu0 %v6256_v60 }
 0x360   : > { %v5697_v14 = vpop.f32.mrb[0].mxu1 }
 0x361   : > { %v5887_v6 = vadd.f32 %v5697_v14, %v7184_v18  ;;  %v3059_v13 = vpop.f32.mrb[1].mxu1 }
 0x362   : > { %v5889_v3 = vadd.f32 %v3059_v13, %v7186_v48  ;;  %v5698_v40 = vpop.f32.mrb[2].mxu1 }
 0x363   : > { %v5888_v4 = vadd.f32 %v5887_v6, %v7304_v39  ;;  %v5891_v30 = vadd.f32 %v5698_v40, %v7191_v25  ;;  %v3062_v2 = vpop.f32.mrb[3].mxu1 }
 0x364   : > { %v5890_v11 = vadd.f32 %v5889_v3, %v7306_v62  ;;  %v5893_v8 = vadd.f32 %v3062_v2, %v7193_v27 }
 0x365   : > { %v3485_v18 = vadd.f32 %v5888_v4, %v7413_v19  ;;  %v5892_v14 = vadd.f32 %v5891_v30, %v7308_v50 }
 0x366   : > { %v3483_v46 = vadd.f32 %v5890_v11, %v7413_v19  ;;  %v5894_v0 = vadd.f32 %v5893_v8, %v7311_v16 }
 0x367   : > { %v3486_v48 = vadd.f32 %v5892_v14, %v7413_v19  ;;  %v3517_v6 = vmax.f32 %v3485_v18, 0.0 }
 0x368   : > { %v3484_v13 = vadd.f32 %v5894_v0, %v7413_v19  ;;  %v5701_v39 = vpop.f32.mrb[4].mxu1  ;;  %v3515_v3 = vmax.f32 %v3483_v46, 0.0 }
 0x369   : > { %v3518_v25 = vmax.f32 %v3486_v48, 0.0  ;;  %v5895_v40 = vadd.f32 %v5701_v39, %v7208_v21  ;;  %v3075_v62 = vpop.f32.mrb[5].mxu1 }
 0x36a   : > { %v3516_v27 = vmax.f32 %v3484_v13, 0.0  ;;  %v5897_v2 = vadd.f32 %v3075_v62, %v7210_v24  ;;  %v5702_v4 = vpop.f32.mrb[6].mxu1  ;;  %v6257_v24 = vld [vmem:[%s7721_s7 + $0x8] sm:$0xff]  }
 0x36b   : > { %v3548_v50 = vpack.c.bf16 %v3518_v25, %v3517_v6  ;;  %v5896_v11 = vadd.f32 %v5895_v40, %v7320_v17  ;;  %v5899_v16 = vadd.f32 %v5702_v4, %v7212_v45  ;;  %v3078_v8 = vpop.f32.mrb[7].mxu1  ;;  %v6258_v6 = vld [vmem:[%s7721_s7 + $0x10] sm:$0xff]  }
 0x36c   : > { %v5898_v30 = vadd.f32 %v5897_v2, %v7322_v7  ;;  %v5901_v0 = vadd.f32 %v3078_v8, %v7214_v35  ;;  %v3547_v18 = vpack.c.bf16 %v3516_v27, %v3515_v3 }
 0x36d   : > { %v3489_v14 = vadd.f32 %v5896_v11, %v7413_v19  ;;  %v5900_v21 = vadd.f32 %v5899_v16, %v7324_v10 }
 0x36e   : > { %v3487_v46 = vadd.f32 %v5898_v30, %v7413_v19  ;;  %v5902_v17 = vadd.f32 %v5901_v0, %v7327_v47  ;;  %5791 = vmatprep.mubr.bf16.mxu0 %v3547_v18 }
 0x36f   : > { %v3490_v45 = vadd.f32 %v5900_v21, %v7413_v19  ;;  %5792 = vmatmul.mubr.bf16.vlgmr.msra.gmra.mrb[100].mxu0 %v3548_v50  ;;  %v3521_v48 = vmax.f32 %v3489_v14, 0.0  ;;  %v6260_v14 = vld [vmem:[%s7721_s7 + $0x20] sm:$0xff]  }
 0x370   : > { %v3488_v7 = vadd.f32 %v5902_v17, %v7413_v19  ;;  %v5705_v35 = vpop.f32.mrb[8].mxu1  ;;  %5824 = vmatpush3.bf16.msra.mxu0 %v6256_v60  ;;  %v3519_v25 = vmax.f32 %v3487_v46, 0.0 }
 0x371   : > { %v3522_v13 = vmax.f32 %v3490_v45, 0.0  ;;  %v5903_v10 = vadd.f32 %v5705_v35, %v7223_v37  ;;  %v3091_v39 = vpop.f32.mrb[9].mxu1  ;;  %5825 = vmatprep.subr.bf16.mxu0 %v6257_v24 }
 0x372   : > { %v3520_v47 = vmax.f32 %v3488_v7, 0.0  ;;  %v5905_v40 = vadd.f32 %v3091_v39, %v7225_v42  ;;  %v5706_v62 = vpop.f32.mrb[10].mxu1  ;;  %v6259_v42 = vld [vmem:[%s7721_s7 + $0x18] sm:$0xff]  }
 0x373   : > { %v5904_v3 = vadd.f32 %v5903_v10, %v7336_v1  ;;  %v5907_v27 = vadd.f32 %v5706_v62, %v7227_v49  ;;  %v3094_v60 = vpop.f32.mrb[11].mxu1  ;;  %v3550_v2 = vpack.c.bf16 %v3522_v13, %v3521_v48  ;;  %v6262_v62 = vld [vmem:[%s7721_s7 + $0x30] sm:$0xff]  }
 0x374   : > { %v5906_v4 = vadd.f32 %v5905_v40, %v7338_v44  ;;  %v5909_v37 = vadd.f32 %v3094_v60, %v7229_v53  ;;  %v3549_v50 = vpack.c.bf16 %v3520_v47, %v3519_v25  ;;  %5826 = vmatpush3.bf16.msra.mxu0 %v6257_v24 }
 0x375   : > { %v3493_v11 = vadd.f32 %v5904_v3, %v7413_v19  ;;  %v5908_v16 = vadd.f32 %v5907_v27, %v7340_v34  ;;  %5827 = vmatprep.subr.bf16.mxu0 %v6258_v6 }
 0x376   : > { %v3491_v1 = vadd.f32 %v5906_v4, %v7413_v19  ;;  %v5910_v49 = vadd.f32 %v5909_v37, %v7343_v29  ;;  %5795 = vmatprep.mubr.bf16.mxu0 %v3549_v50 }
 0x377   : > { %v3494_v44 = vadd.f32 %v5908_v16, %v7413_v19  ;;  %5796 = vmatmul.mubr.bf16.gmra.mrb[104].mxu0 %v3550_v2  ;;  %v3525_v30 = vmax.f32 %v3493_v11, 0.0 }
 0x378   : > { %v3492_v53 = vadd.f32 %v5910_v49, %v7413_v19  ;;  %v5709_v8 = vpop.f32.mrb[12].mxu1  ;;  %5828 = vmatpush3.bf16.msra.mxu0 %v6258_v6  ;;  %v3523_v21 = vmax.f32 %v3491_v1, 0.0 }
 0x379   : > { %v3526_v0 = vmax.f32 %v3494_v44, 0.0  ;;  %v5911_v34 = vadd.f32 %v5709_v8, %v7236_v54  ;;  %v3107_v18 = vpop.f32.mrb[13].mxu1  ;;  %5829 = vmatprep.subr.bf16.mxu0 %v6259_v42 }
 0x37a   : > { %v3524_v29 = vmax.f32 %v3492_v53, 0.0  ;;  %v5913_v24 = vadd.f32 %v3107_v18, %v7238_v58  ;;  %v5710_v46 = vpop.f32.mrb[14].mxu1  ;;  %v6261_v58 = vld [vmem:[%s7721_s7 + $0x28] sm:$0xff]  }
 0x37b   : > { %v5912_v17 = vadd.f32 %v5911_v34, %v7349_v38  ;;  %v5915_v45 = vadd.f32 %v5710_v46, %v7240_v61  ;;  %v3110_v7 = vpop.f32.mrb[15].mxu1  ;;  %v3552_v35 = vpack.c.bf16 %v3526_v0, %v3525_v30 }
 0x37c   : > { %v5914_v48 = vadd.f32 %v5913_v24, %v7351_v31  ;;  %v5917_v54 = vadd.f32 %v3110_v7, %v7242_v5  ;;  %v3551_v13 = vpack.c.bf16 %v3524_v29, %v3523_v21  ;;  %5830 = vmatpush3.bf16.msra.mxu0 %v6259_v42 }
 0x37d   : > { %v3497_v10 = vadd.f32 %v5912_v17, %v7413_v19  ;;  %v5916_v39 = vadd.f32 %v5915_v45, %v7353_v41  ;;  %5831 = vmatprep.subr.bf16.mxu0 %v6260_v14 }
 0x37e   : > { %v3495_v38 = vadd.f32 %v5914_v48, %v7413_v19  ;;  %v5918_v61 = vadd.f32 %v5917_v54, %v7355_v9  ;;  %5799 = vmatprep.mubr.bf16.mxu0 %v3551_v13 }
 0x37f   : > { %v3498_v31 = vadd.f32 %v5916_v39, %v7413_v19  ;;  %5800 = vmatmul.mubr.bf16.gmra.mrb[108].mxu0 %v3552_v35  ;;  %v3529_v25 = vmax.f32 %v3497_v10, 0.0 }
 0x380   : > { %v3496_v5 = vadd.f32 %v5918_v61, %v7413_v19  ;;  %v5713_v6 = vpop.f32.mrb[16].mxu1  ;;  %5832 = vmatpush3.bf16.msra.mxu0 %v6260_v14  ;;  %v3527_v3 = vmax.f32 %v3495_v38, 0.0 }
 0x381   : > { %v3530_v47 = vmax.f32 %v3498_v31, 0.0  ;;  %v5919_v41 = vadd.f32 %v5713_v6, %v7248_v26  ;;  %v3123_v40 = vpop.f32.mrb[17].mxu1  ;;  %5833 = vmatprep.subr.bf16.mxu0 %v6261_v58  ;;  %v7738_v6 = vld [vmem:[#allocation14_spill] sm:$0xff] }
 0x382   : > { %v3528_v9 = vmax.f32 %v3496_v5, 0.0  ;;  %v5921_v27 = vadd.f32 %v3123_v40, %v7250_v59  ;;  %v5714_v60 = vpop.f32.mrb[18].mxu1  ;;  %v6263_v59 = vld [vmem:[%s7721_s7 + $0x38] sm:$0xff]  }
 0x383   : > { %v5920_v2 = vadd.f32 %v5919_v41, %v7361_v32  ;;  %v5923_v4 = vadd.f32 %v5714_v60, %v7252_v57  ;;  %v3126_v37 = vpop.f32.mrb[19].mxu1  ;;  %v3554_v50 = vpack.c.bf16 %v3530_v47, %v3529_v25  ;;  %v7739_v47 = vld [vmem:[#allocation8_spill] sm:$0xff] }
 0x384   : > { %v5922_v11 = vadd.f32 %v5921_v27, %v7363_v51  ;;  %v5925_v26 = vadd.f32 %v3126_v37, %v7254_v15  ;;  %v3553_v16 = vpack.c.bf16 %v3528_v9, %v3527_v3  ;;  %5834 = vmatpush3.bf16.msra.mxu0 %v6261_v58  ;;  %v7736_v58 = vld [vmem:[#allocation13_spill] sm:$0xff]  ;;  %v7741_v27 = vld [vmem:[#allocation16_spill] sm:$0xff] }
 0x385   : > { %v3501_v42 = vadd.f32 %v5920_v2, %v7413_v19  ;;  %v5924_v1 = vadd.f32 %v5923_v4, %v7365_v23  ;;  %5835 = vmatprep.subr.bf16.mxu0 %v6262_v62 }
 0x386   : > { %v3499_v32 = vadd.f32 %v5922_v11, %v7413_v19  ;;  %v5926_v57 = vadd.f32 %v5925_v26, %v7367_v52  ;;  %5803 = vmatprep.mubr.bf16.mxu0 %v3553_v16 }
 0x387   : > { %v3502_v51 = vadd.f32 %v5924_v1, %v7413_v19  ;;  %5804 = vmatmul.mubr.bf16.gmra.mrb[112].mxu0 %v3554_v50  ;;  %v3533_v44 = vmax.f32 %v3501_v42, 0.0  ;;  %v7742_v1 = vld [vmem:[#allocation9_spill] sm:$0xff] }
 0x388   : > { %v3500_v15 = vadd.f32 %v5926_v57, %v7413_v19  ;;  %v5717_v49 = vpop.f32.mrb[20].mxu1  ;;  %5836 = vmatpush3.bf16.msra.mxu0 %v6262_v62  ;;  %v3531_v30 = vmax.f32 %v3499_v32, 0.0  ;;  %v7743_v57 = vld [vmem:[#allocation10_spill] sm:$0xff] }
 0x389   : > { %v3534_v53 = vmax.f32 %v3502_v51, 0.0  ;;  %v5927_v23 = vadd.f32 %v5717_v49, %v7260_v12  ;;  %v3139_v8 = vpop.f32.mrb[21].mxu1  ;;  %5837 = vmatprep.subr.bf16.mxu0 %v6263_v59 }
 0x38a   : > { %v3532_v0 = vmax.f32 %v3500_v15, 0.0  ;;  %v5929_v34 = vadd.f32 %v3139_v8, %v7262_v36  ;;  %v5718_v18 = vpop.f32.mrb[22].mxu1 }
 0x38b   : > { %v5928_v52 = vadd.f32 %v5927_v23, %v7374_v20  ;;  %v5931_v14 = vadd.f32 %v5718_v18, %v7264_v33  ;;  %v3142_v21 = vpop.f32.mrb[23].mxu1  ;;  %v3556_v29 = vpack.c.bf16 %v3534_v53, %v3533_v44  ;;  %v7744_v44 = vld [vmem:[#allocation11_spill] sm:$0xff] }
 0x38c   : > { %v5930_v24 = vadd.f32 %v5929_v34, %v7376_v55  ;;  %v5933_v46 = vadd.f32 %v3142_v21, %v7266_v63  ;;  %v3555_v17 = vpack.c.bf16 %v3532_v0, %v3531_v30  ;;  %5838 = vmatpush3.bf16.msra.mxu0 %v6263_v59  ;;  %v7745_v30 = vld [vmem:[#allocation12_spill] sm:$0xff] }
 0x38d   : > { %v3505_v12 = vadd.f32 %v5928_v52, %v7413_v19  ;;  %v5932_v45 = vadd.f32 %v5931_v14, %v7378_v56 }
 0x38e   : > { %v3503_v7 = vadd.f32 %v5930_v24, %v7413_v19  ;;  %v5934_v36 = vadd.f32 %v5933_v46, %v7380_v28  ;;  %5807 = vmatprep.mubr.bf16.mxu0 %v3555_v17  ;;  %v7737_v28 = vld [vmem:[#allocation7_spill] sm:$0xff]  ;;  %v6264_v17 = vld [vmem:[%s6441_s14 + $0x10] sm:$0xff] }
 0x38f   : > { %v3506_v20 = vadd.f32 %v5932_v45, %v7413_v19  ;;  %5808 = vmatmul.mubr.bf16.gmra.mrb[116].mxu0 %v3556_v29  ;;  %v3537_v55 = vmax.f32 %v3505_v12, 0.0  ;;  %v6265_v12 = vld [vmem:[%s6441_s14 + $0x18] sm:$0xff]  ;;  %v6266_v45 = vld [vmem:[%s6441_s14 + $0x20] sm:$0xff] }
 0x390   : > { %v3504_v33 = vadd.f32 %v5934_v36, %v7413_v19  ;;  %v5721_v35 = vpop.f32.mrb[24].mxu1  ;;  %v3535_v13 = vmax.f32 %v3503_v7, 0.0  ;;  %v6268_v7 = vld [vmem:[%s6441_s14 + $0x30] sm:$0xff]  ;;  %v6269_v36 = vld [vmem:[%s6441_s14 + $0x38] sm:$0xff] }
 0x391   : > { %v3538_v48 = vmax.f32 %v3506_v20, 0.0  ;;  %v5935_v63 = vadd.f32 %v5721_v35, %v7273_v22  ;;  %v3155_v54 = vpop.f32.mrb[25].mxu1  ;;  %v7740_v22 = vld [vmem:[#allocation15_spill] sm:$0xff]  ;;  %v6272_v35 = vld [vmem:[%s6441_s14 + $0x50] sm:$0xff] }
 0x392   : > { %v3536_v10 = vmax.f32 %v3504_v33, 0.0  ;;  %v5937_v56 = vadd.f32 %v3155_v54, %v7275_v43  ;;  %v5722_v39 = vpop.f32.mrb[26].mxu1  ;;  %v6270_v20 = vld [vmem:[%s6441_s14 + $0x40] sm:$0xff]  ;;  %v6271_v33 = vld [vmem:[%s6441_s14 + $0x48] sm:$0xff]  ;;  %v6276_v54 = vld [vmem:[%s6441_s14 + $0x70] sm:$0xff] }
 0x393   : > { %v5936_v38 = vadd.f32 %v5935_v63, %v7736_v58  ;;  %v5939_v61 = vadd.f32 %v5722_v39, %v7737_v28  ;;  %v3158_v31 = vpop.f32.mrb[27].mxu1  ;;  %v3558_v5 = vpack.c.bf16 %v3538_v48, %v3537_v55  ;;  %v6273_v55 = vld [vmem:[%s6441_s14 + $0x58] sm:$0xff]  ;;  %v6274_v48 = vld [vmem:[%s6441_s14 + $0x60] sm:$0xff]  ;;  %v6275_v63 = vld [vmem:[%s6441_s14 + $0x68] sm:$0xff] }
 0x394   : > { %v5938_v25 = vadd.f32 %v5937_v56, %v7738_v6  ;;  %v5941_v41 = vadd.f32 %v3158_v31, %v7739_v47  ;;  %v3557_v40 = vpack.c.bf16 %v3536_v10, %v3535_v13  ;;  %v6277_v13 = vld [vmem:[%s6441_s14 + $0x78] sm:$0xff]  ;;  %v6278_v10 = vld [vmem:[%s6441_s14 + $0x80] sm:$0xff]  ;;  %v6279_v56 = vld [vmem:[%s6441_s14 + $0x88] sm:$0xff] }
 0x395   : > { %v3509_v62 = vadd.f32 %v5936_v38, %v7413_v19  ;;  %v5940_v3 = vadd.f32 %v5939_v61, %v7740_v22 }
 0x396   : > { %v3507_v9 = vadd.f32 %v5938_v25, %v7413_v19  ;;  %v5942_v43 = vadd.f32 %v5941_v41, %v7741_v27  ;;  %5811 = vmatprep.mubr.bf16.mxu0 %v3557_v40 }
 0x397   : > { %v3510_v60 = vadd.f32 %v5940_v3, %v7413_v19  ;;  %5812 = vmatmul.mubr.bf16.gmra.mrb[120].mxu0 %v3558_v5  ;;  %v3541_v4 = vmax.f32 %v3509_v62, 0.0 }
 0x398   : > { %v3508_v2 = vadd.f32 %v5942_v43, %v7413_v19  ;;  %v3539_v50 = vmax.f32 %v3507_v9, 0.0 }
 0x399   : > { %v3542_v37 = vmax.f32 %v3510_v60, 0.0 }
 0x39a   : > { %v3540_v11 = vmax.f32 %v3508_v2, 0.0 }
 0x39b   : > { %v3560_v26 = vpack.c.bf16 %v3542_v37, %v3541_v4 }
 0x39c   : > { %v3559_v16 = vpack.c.bf16 %v3540_v11, %v3539_v50 }
 0x39e   : > { %5815 = vmatprep.mubr.bf16.mxu0 %v3559_v16 }
 0x39f   : > { %5816 = vmatmul.mubr.bf16.gmra.mrb[124].mxu0 %v3560_v26 }
 0x3a4   : > { %v5773_v42 = vpop.f32.mrb[28].mxu1 }
 0x3a5   : > { %v5943_v59 = vadd.f32 %v5773_v42, %v7742_v1  ;;  %v3429_v32 = vpop.f32.mrb[29].mxu1 }
 0x3a6   : > { %v5944_v51 = vadd.f32 %v3429_v32, %v7743_v57  ;;  %v5774_v15 = vpop.f32.mrb[30].mxu1 }
 0x3a7   : > { %v3513_v49 = vadd.f32 %v5943_v59, %v7413_v19  ;;  %v5945_v53 = vadd.f32 %v5774_v15, %v7744_v44  ;;  %v3432_v23 = vpop.f32.mrb[31].mxu1  ;;  %v7594_v15 = vld [vmem:[%s7720_s6] ss:$0 sm:$0xff] }
 0x3a8   : > { %v3511_v8 = vadd.f32 %v5944_v51, %v7413_v19  ;;  %v5946_v0 = vadd.f32 %v3432_v23, %v7745_v30 }
 0x3a9   : > { %v3514_v34 = vadd.f32 %v5945_v53, %v7413_v19  ;;  %v3545_v52 = vmax.f32 %v3513_v49, 0.0  ;;  %v7599_v49 = vld [vmem:[%s7722_s8] ss:$0 sm:$0xff] }
 0x3aa   : > { %v3512_v18 = vadd.f32 %v5946_v0, %v7413_v19  ;;  %v3543_v21 = vmax.f32 %v3511_v8, 0.0  ;;  %v6267_v19 = vld [vmem:[%s6441_s14 + $0x28] sm:$0xff] }
 0x3ab   : > { %v3546_v14 = vmax.f32 %v3514_v34, 0.0 }
 0x3ac   : > { %v3544_v29 = vmax.f32 %v3512_v18, 0.0 }
 0x3ad   : > { %v3562_v24 = vpack.c.bf16 %v3546_v14, %v3545_v52 }
 0x3ae   : > { %v3561_v46 = vpack.c.bf16 %v3544_v29, %v3543_v21 }
 0x3b0   : > { %5819 = vmatprep.mubr.bf16.mxu0 %v3561_v46 }
 0x3b1   : > { %5820 = vmatmul.mubr.bf16.gmra.mrb[128].mxu0 %v3562_v24 }
 0x3b2   : > { %5839 = vmatprep.mubr.bf16.mxu0 %v6264_v17 }
 0x3b9   : > { %5840 = vmatmul.mubr.bf16.vlgmr.msra.gmra.mrb[132].mxu0 %v6265_v12 }
 0x3ba   : > { %5843 = vmatprep.mubr.bf16.mxu0 %v6266_v45 }
 0x3c1   : > { %5844 = vmatmul.mubr.bf16.gmra.mrb[136].mxu0 %v6267_v19 }
 0x3c2   : > { %5847 = vmatprep.mubr.bf16.mxu0 %v6268_v7 }
 0x3c9   : > { %5848 = vmatmul.mubr.bf16.gmra.mrb[140].mxu0 %v6269_v36 }
 0x3ca   : > { %5851 = vmatprep.mubr.bf16.mxu0 %v6270_v20 }
 0x3d1   : > { %5852 = vmatmul.mubr.bf16.gmra.mrb[144].mxu0 %v6271_v33 }
 0x3d2   : > { %5855 = vmatprep.mubr.bf16.mxu0 %v6272_v35 }
 0x3d9   : > { %5856 = vmatmul.mubr.bf16.gmra.mrb[148].mxu0 %v6273_v55 }
 0x3da   : > { %5859 = vmatprep.mubr.bf16.mxu0 %v6274_v48 }
 0x3e1   : > { %5860 = vmatmul.mubr.bf16.gmra.mrb[152].mxu0 %v6275_v63 }
 0x3e2   : > { %5863 = vmatprep.mubr.bf16.mxu0 %v6276_v54 }
 0x3e9   : > { %5864 = vmatmul.mubr.bf16.gmra.mrb[156].mxu0 %v6277_v13 }
 0x3ea   : > { %5867 = vmatprep.mubr.bf16.mxu0 %v6278_v10 }
 0x3f1   : > { %5868 = vmatmul.mubr.bf16.gmra.mrb[160].mxu0 %v6279_v56 }
 0x442   : > { %v5793_v39 = vpop.f32.mrb[100].mxu0 }
 0x443   : > { %v3668_v58 = vpop.f32.mrb[101].mxu0  ;;  %v3677_v44 = vadd.f32 %v5793_v39, %v7594_v15 }
 0x444   : > { %v5794_v38 = vpop.f32.mrb[102].mxu0  ;;  %v3669_v53 = vadd.f32 %v7594_v15, %v3668_v58 }
 0x445   : > { %v3671_v28 = vpop.f32.mrb[103].mxu0  ;;  %v3680_v8 = vadd.f32 %v5794_v38, %v7594_v15  ;;  %v3797_v14 = vmax.f32 %v3677_v44, 0.0 }
 0x446   : > { %v3672_v34 = vadd.f32 %v7594_v15, %v3671_v28  ;;  %v3795_v46 = vmax.f32 %v3669_v53, 0.0 }
 0x447   : > { %v3798_v45 = vmax.f32 %v3680_v8, 0.0 }
 0x448   : > { %v3796_v36 = vmax.f32 %v3672_v34, 0.0 }
 0x44a   : > { %v5797_v61 = vpop.f32.mrb[104].mxu0 }
 0x44b   : > { %v3684_v31 = vpop.f32.mrb[105].mxu0  ;;  %v3693_v35 = vadd.f32 %v5797_v61, %v7594_v15 }
 0x44c   : > { %v5798_v5 = vpop.f32.mrb[106].mxu0  ;;  %v3685_v48 = vadd.f32 %v7594_v15, %v3684_v31 }
 0x44d   : > { %v3687_v6 = vpop.f32.mrb[107].mxu0  ;;  %v3696_v13 = vadd.f32 %v5798_v5, %v7594_v15 }
 0x44e   : > { %v3688_v38 = vadd.f32 %v7594_v15, %v3687_v6 }
 0x452   : > { %v7543_v25 = vpop.f32.mrb[108].mxu0 }
 0x453   : > { %v7545_v47 = vpop.f32.mrb[109].mxu0 }
 0x454   : > { %v7547_v41 = vpop.f32.mrb[110].mxu0 }
 0x455   : > { %v7549_v40 = vpop.f32.mrb[111].mxu0 }
 0x45a   : > { %v7551_v62 = vpop.f32.mrb[112].mxu0 }
 0x45b   : > { %v7553_v22 = vpop.f32.mrb[113].mxu0 }
 0x45c   : > { %v7555_v3 = vpop.f32.mrb[114].mxu0 }
 0x45d   : > { %v7557_v9 = vpop.f32.mrb[115].mxu0 }
 0x462   : > { %v7559_v27 = vpop.f32.mrb[116].mxu0 }
 0x463   : > { %v7561_v43 = vpop.f32.mrb[117].mxu0 }
 0x464   : > { %v7563_v60 = vpop.f32.mrb[118].mxu0 }
 0x465   : > { %v7565_v2 = vpop.f32.mrb[119].mxu0 }
 0x46a   : > { %v7567_v4 = vpop.f32.mrb[120].mxu0 }
 0x46b   : > { %v7569_v37 = vpop.f32.mrb[121].mxu0 }
 0x46c   : > { %v7571_v50 = vpop.f32.mrb[122].mxu0 }
 0x46d   : > { %v7573_v11 = vpop.f32.mrb[123].mxu0 }
 0x472   : > { %v7575_v26 = vpop.f32.mrb[124].mxu0 }
 0x473   : > { %v7577_v16 = vpop.f32.mrb[125].mxu0 }
 0x474   : > { %v7579_v42 = vpop.f32.mrb[126].mxu0 }
 0x475   : > { %v7581_v1 = vpop.f32.mrb[127].mxu0 }
 0x484   : > { %v7583_v59 = vpop.f32.mrb[128].mxu0 }
 0x485   : > { %v7585_v32 = vpop.f32.mrb[129].mxu0 }
 0x486   : > { %v7587_v57 = vpop.f32.mrb[130].mxu0 }
 0x487   : > { %v7589_v51 = vpop.f32.mrb[131].mxu0 }
 0x48c   : > { %v5841_v23 = vpop.f32.mrb[132].mxu0 }
 0x48d   : > { %v3941_v30 = vadd.f32 %v5841_v23, %v7599_v49  ;;  %v3932_v0 = vpop.f32.mrb[133].mxu0  ;;  %v3801_v23 = vmax.f32 %v3693_v35, 0.0 }
 0x48e   : > { %v3933_v18 = vadd.f32 %v7599_v49, %v3932_v0  ;;  %v5842_v52 = vpop.f32.mrb[134].mxu0  ;;  %v3799_v0 = vmax.f32 %v3685_v48, 0.0  ;;  %v3704_v48 = vadd.f32 %v7594_v15, %v7549_v40 }
 0x48f   : > { %v4061_v21 = vmax.f32 %v3941_v30, 0.0  ;;  %v3944_v29 = vadd.f32 %v5842_v52, %v7599_v49  ;;  %v3935_v24 = vpop.f32.mrb[135].mxu0 }
 0x490   : > { %v4059_v17 = vmax.f32 %v3933_v18, 0.0  ;;  %v3936_v12 = vadd.f32 %v7599_v49, %v3935_v24 }
 0x491   : > { %v4093_v19 = vadd.f32 %v4061_v21, %v3797_v14  ;;  %v4062_v7 = vmax.f32 %v3944_v29, 0.0  ;;  %v3802_v14 = vmax.f32 %v3696_v13, 0.0  ;;  %v3800_v29 = vmax.f32 %v3688_v38, 0.0 }
 0x492   : > { %v4091_v20 = vadd.f32 %v4059_v17, %v3795_v46  ;;  %v4060_v33 = vmax.f32 %v3936_v12, 0.0  ;;  %v3709_v17 = vadd.f32 %v7543_v25, %v7594_v15 }
 0x493   : > { %v4094_v55 = vadd.f32 %v4062_v7, %v3798_v45  ;;  %v4125_v10 = vmax.f32 %v4093_v19, 0.0  ;;  %v3701_v45 = vadd.f32 %v7594_v15, %v7545_v47 }
 0x494   : > { %v4092_v63 = vadd.f32 %v4060_v33, %v3796_v36  ;;  %v5845_v54 = vpop.f32.mrb[136].mxu0  ;;  %v4123_v28 = vmax.f32 %v4091_v20, 0.0  ;;  %v3712_v36 = vadd.f32 %v7547_v41, %v7594_v15  ;;  %v3805_v13 = vmax.f32 %v3709_v17, 0.0 }
 0x495   : > { %v4126_v56 = vmax.f32 %v4094_v55, 0.0  ;;  %v3957_v39 = vadd.f32 %v5845_v54, %v7599_v49  ;;  %v3948_v58 = vpop.f32.mrb[137].mxu0 }
 0x496   : > { %v4124_v44 = vmax.f32 %v4092_v63, 0.0  ;;  %v3949_v53 = vadd.f32 %v7599_v49, %v3948_v58  ;;  %v5846_v61 = vpop.f32.mrb[138].mxu0  ;;  %v3803_v58 = vmax.f32 %v3701_v45, 0.0 }
 0x497   : > { %v4908_v31 = vpack.c.bf16 %v4126_v56, %v4125_v10  ;;  %v4065_v8 = vmax.f32 %v3957_v39, 0.0  ;;  %v3960_v30 = vadd.f32 %v5846_v61, %v7599_v49  ;;  %v3951_v5 = vpop.f32.mrb[139].mxu0 }
 0x498   : > { %v4903_v34 = vpack.c.bf16 %v4124_v44, %v4123_v28  ;;  %v4063_v18 = vmax.f32 %v3949_v53, 0.0  ;;  %v3952_v52 = vadd.f32 %v7599_v49, %v3951_v5  ;;  %v3806_v53 = vmax.f32 %v3712_v36, 0.0 }
 0x499   : > { %4980 = vst [vmem:[%s6385_s20 + $0x8] sm:$0xff] %v4908_v31   ;;  %v4097_v6 = vadd.f32 %v4065_v8, %v3801_v23  ;;  %v4066_v21 = vmax.f32 %v3960_v30, 0.0  ;;  %v3804_v23 = vmax.f32 %v3704_v48, 0.0  ;;  %v3725_v30 = vadd.f32 %v7551_v62, %v7594_v15 }
 0x49a   : > { %4904 = vst [vmem:[%s6385_s20] sm:$0xff] %v4903_v34   ;;  %v4095_v24 = vadd.f32 %v4063_v18, %v3799_v0  ;;  %v4064_v46 = vmax.f32 %v3952_v52, 0.0  ;;  %v3717_v0 = vadd.f32 %v7594_v15, %v7553_v22  ;;  %v3728_v52 = vadd.f32 %v7555_v3, %v7594_v15 }
 0x49b   : > { %v4098_v12 = vadd.f32 %v4066_v21, %v3802_v14  ;;  %v4129_v20 = vmax.f32 %v4097_v6, 0.0 }
 0x49c   : > { %v4096_v19 = vadd.f32 %v4064_v46, %v3800_v29  ;;  %v5849_v7 = vpop.f32.mrb[140].mxu0  ;;  %v4127_v63 = vmax.f32 %v4095_v24, 0.0  ;;  %v3720_v24 = vadd.f32 %v7594_v15, %v7557_v9  ;;  %v3807_v36 = vmax.f32 %v3717_v0, 0.0 }
 0x49d   : > { %v4130_v33 = vmax.f32 %v4098_v12, 0.0  ;;  %v3973_v35 = vadd.f32 %v5849_v7, %v7599_v49  ;;  %v3964_v55 = vpop.f32.mrb[141].mxu0  ;;  %v3809_v12 = vmax.f32 %v3725_v30, 0.0 }
 0x49e   : > { %v4128_v25 = vmax.f32 %v4096_v19, 0.0  ;;  %v3965_v54 = vadd.f32 %v7599_v49, %v3964_v55  ;;  %v5850_v47 = vpop.f32.mrb[142].mxu0  ;;  %v3810_v55 = vmax.f32 %v3728_v52, 0.0 }
 0x49f   : > { %v4918_v10 = vpack.c.bf16 %v4130_v33, %v4129_v20  ;;  %v4069_v56 = vmax.f32 %v3973_v35, 0.0  ;;  %v3976_v41 = vadd.f32 %v5850_v47, %v7599_v49  ;;  %v3967_v39 = vpop.f32.mrb[143].mxu0  ;;  %v3741_v47 = vadd.f32 %v7559_v27, %v7594_v15 }
 0x4a0   : > { %v4913_v38 = vpack.c.bf16 %v4128_v25, %v4127_v63  ;;  %v4067_v28 = vmax.f32 %v3965_v54, 0.0  ;;  %v3968_v44 = vadd.f32 %v7599_v49, %v3967_v39  ;;  %v3808_v63 = vmax.f32 %v3720_v24, 0.0 }
 0x4a1   : > { %4982 = vst [vmem:[%s6385_s20 + $0x18] sm:$0xff] %v4918_v10   ;;  %v4101_v40 = vadd.f32 %v4069_v56, %v3805_v13  ;;  %v4070_v61 = vmax.f32 %v3976_v41, 0.0  ;;  %v3733_v10 = vadd.f32 %v7594_v15, %v7561_v43  ;;  %v3744_v39 = vadd.f32 %v7563_v60, %v7594_v15 }
 0x4a2   : > { %4981 = vst [vmem:[%s6385_s20 + $0x10] sm:$0xff] %v4913_v38   ;;  %v4099_v31 = vadd.f32 %v4067_v28, %v3803_v58  ;;  %v4068_v8 = vmax.f32 %v3968_v44, 0.0  ;;  %v3757_v24 = vadd.f32 %v7567_v4, %v7594_v15 }
 0x4a3   : > { %v4102_v5 = vadd.f32 %v4070_v61, %v3806_v53  ;;  %v4133_v14 = vmax.f32 %v4101_v40, 0.0  ;;  %v3736_v53 = vadd.f32 %v7594_v15, %v7565_v2  ;;  %v3814_v52 = vmax.f32 %v3744_v39, 0.0 }
 0x4a4   : > { %v4100_v34 = vadd.f32 %v4068_v8, %v3804_v23  ;;  %v5853_v18 = vpop.f32.mrb[144].mxu0  ;;  %v4131_v46 = vmax.f32 %v4099_v31, 0.0  ;;  %v3813_v23 = vmax.f32 %v3741_v47, 0.0 }
 0x4a5   : > { %v4134_v6 = vmax.f32 %v4102_v5, 0.0  ;;  %v3989_v21 = vadd.f32 %v5853_v18, %v7599_v49  ;;  %v3980_v29 = vpop.f32.mrb[145].mxu0  ;;  %v3811_v5 = vmax.f32 %v3733_v10, 0.0 }
 0x4a6   : > { %v4132_v62 = vmax.f32 %v4100_v34, 0.0  ;;  %v3981_v17 = vadd.f32 %v7599_v49, %v3980_v29  ;;  %v5854_v22 = vpop.f32.mrb[146].mxu0 }
 0x4a7   : > { %v4928_v45 = vpack.c.bf16 %v4134_v6, %v4133_v14  ;;  %v4073_v19 = vmax.f32 %v3989_v21, 0.0  ;;  %v3992_v3 = vadd.f32 %v5854_v22, %v7599_v49  ;;  %v3983_v7 = vpop.f32.mrb[147].mxu0  ;;  %v3812_v6 = vmax.f32 %v3736_v53, 0.0 }
 0x4a8   : > { %v4923_v20 = vpack.c.bf16 %v4132_v62, %v4131_v46  ;;  %v4071_v33 = vmax.f32 %v3981_v17, 0.0  ;;  %v3984_v35 = vadd.f32 %v7599_v49, %v3983_v7  ;;  %v3749_v62 = vadd.f32 %v7594_v15, %v7569_v37 }
 0x4a9   : > { %4984 = vst [vmem:[%s6385_s20 + $0x28] sm:$0xff] %v4928_v45   ;;  %v4105_v9 = vadd.f32 %v4073_v19, %v3809_v12  ;;  %v4074_v48 = vmax.f32 %v3992_v3, 0.0  ;;  %v3760_v12 = vadd.f32 %v7571_v50, %v7594_v15 }
 0x4aa   : > { %4983 = vst [vmem:[%s6385_s20 + $0x20] sm:$0xff] %v4923_v20   ;;  %v4103_v25 = vadd.f32 %v4071_v33, %v3807_v36  ;;  %v4072_v54 = vmax.f32 %v3984_v35, 0.0  ;;  %v3752_v36 = vadd.f32 %v7594_v15, %v7573_v11  ;;  %v3817_v35 = vmax.f32 %v3757_v24, 0.0 }
 0x4ab   : > { %v4106_v13 = vadd.f32 %v4074_v48, %v3810_v55  ;;  %v4137_v58 = vmax.f32 %v4105_v9, 0.0 }
 0x4ac   : > { %v4104_v56 = vadd.f32 %v4072_v54, %v3808_v63  ;;  %v5857_v41 = vpop.f32.mrb[148].mxu0  ;;  %v4135_v40 = vmax.f32 %v4103_v25, 0.0  ;;  %v3815_v63 = vmax.f32 %v3749_v62, 0.0  ;;  %v3789_v62 = vadd.f32 %v7583_v59, %v7594_v15 }
 0x4ad   : > { %v4138_v38 = vmax.f32 %v4106_v13, 0.0  ;;  %v4005_v28 = vadd.f32 %v5857_v41, %v7599_v49  ;;  %v3996_v44 = vpop.f32.mrb[149].mxu0  ;;  %v3818_v13 = vmax.f32 %v3760_v12, 0.0 }
 0x4ae   : > { %v4136_v27 = vmax.f32 %v4104_v56, 0.0  ;;  %v3997_v61 = vadd.f32 %v7599_v49, %v3996_v44  ;;  %v5858_v43 = vpop.f32.mrb[150].mxu0  ;;  %v3816_v56 = vmax.f32 %v3752_v36, 0.0 }
 0x4af   : > { %v4938_v31 = vpack.c.bf16 %v4138_v38, %v4137_v58  ;;  %v4077_v8 = vmax.f32 %v4005_v28, 0.0  ;;  %v4008_v60 = vadd.f32 %v5858_v43, %v7599_v49  ;;  %v3999_v30 = vpop.f32.mrb[151].mxu0  ;;  %v3773_v58 = vadd.f32 %v7575_v26, %v7594_v15 }
 0x4b0   : > { %v4933_v0 = vpack.c.bf16 %v4136_v27, %v4135_v40  ;;  %v4075_v34 = vmax.f32 %v3997_v61, 0.0  ;;  %v4000_v18 = vadd.f32 %v7599_v49, %v3999_v30  ;;  %v3765_v28 = vadd.f32 %v7594_v15, %v7577_v16 }
 0x4b1   : > { %4986 = vst [vmem:[%s6385_s20 + $0x38] sm:$0xff] %v4938_v31   ;;  %v4109_v2 = vadd.f32 %v4077_v8, %v3813_v23  ;;  %v4078_v14 = vmax.f32 %v4008_v60, 0.0  ;;  %v3776_v40 = vadd.f32 %v7579_v42, %v7594_v15  ;;  %v3768_v31 = vadd.f32 %v7594_v15, %v7581_v1 }
 0x4b2   : > { %4985 = vst [vmem:[%s6385_s20 + $0x30] sm:$0xff] %v4933_v0   ;;  %v4107_v21 = vadd.f32 %v4075_v34, %v3811_v5  ;;  %v4076_v29 = vmax.f32 %v4000_v18, 0.0  ;;  %v3821_v30 = vmax.f32 %v3773_v58, 0.0  ;;  %v3819_v18 = vmax.f32 %v3765_v28, 0.0 }
 0x4b3   : > { %v4110_v46 = vadd.f32 %v4078_v14, %v3814_v52  ;;  %v4141_v45 = vmax.f32 %v4109_v2, 0.0 }
 0x4b4   : > { %v4108_v17 = vadd.f32 %v4076_v29, %v3812_v6  ;;  %v5861_v22 = vpop.f32.mrb[152].mxu0  ;;  %v4139_v20 = vmax.f32 %v4107_v21, 0.0  ;;  %v3822_v6 = vmax.f32 %v3776_v40, 0.0  ;;  %v3820_v29 = vmax.f32 %v3768_v31, 0.0 }
 0x4b5   : > { %v4142_v19 = vmax.f32 %v4110_v46, 0.0  ;;  %v4021_v3 = vadd.f32 %v5861_v22, %v7599_v49  ;;  %v4012_v7 = vpop.f32.mrb[153].mxu0  ;;  %v3781_v22 = vadd.f32 %v7594_v15, %v7585_v32 }
 0x4b6   : > { %v4140_v4 = vmax.f32 %v4108_v17, 0.0  ;;  %v4013_v33 = vadd.f32 %v7599_v49, %v4012_v7  ;;  %v5862_v37 = vpop.f32.mrb[154].mxu0 }
 0x4b7   : > { %v4948_v55 = vpack.c.bf16 %v4142_v19, %v4141_v45  ;;  %v4081_v9 = vmax.f32 %v4021_v3, 0.0  ;;  %v4024_v50 = vadd.f32 %v5862_v37, %v7599_v49  ;;  %v4015_v48 = vpop.f32.mrb[155].mxu0  ;;  %v3792_v19 = vadd.f32 %v7587_v57, %v7594_v15 }
 0x4b8   : > { %v4943_v25 = vpack.c.bf16 %v4140_v4, %v4139_v20  ;;  %v4079_v54 = vmax.f32 %v4013_v33, 0.0  ;;  %v4016_v47 = vadd.f32 %v7599_v49, %v4015_v48  ;;  %v3784_v4 = vadd.f32 %v7594_v15, %v7589_v51 }
 0x4b9   : > { %4988 = vst [vmem:[%s6385_s20 + $0x48] sm:$0xff] %v4948_v55   ;;  %v4113_v11 = vadd.f32 %v4081_v9, %v3817_v35  ;;  %v4082_v10 = vmax.f32 %v4024_v50, 0.0  ;;  %v3825_v35 = vmax.f32 %v3789_v62, 0.0  ;;  %v3823_v48 = vmax.f32 %v3781_v22, 0.0 }
 0x4ba   : > { %4987 = vst [vmem:[%s6385_s20 + $0x40] sm:$0xff] %v4943_v25   ;;  %v4111_v41 = vadd.f32 %v4079_v54, %v3815_v63  ;;  %v4080_v39 = vmax.f32 %v4016_v47, 0.0  ;;  %v3826_v47 = vmax.f32 %v3792_v19, 0.0 }
 0x4bb   : > { %v4114_v38 = vadd.f32 %v4082_v10, %v3818_v13  ;;  %v4145_v27 = vmax.f32 %v4113_v11, 0.0  ;;  %v3824_v13 = vmax.f32 %v3784_v4, 0.0 }
 0x4bc   : > { %v4112_v44 = vadd.f32 %v4080_v39, %v3816_v56  ;;  %v5865_v53 = vpop.f32.mrb[156].mxu0  ;;  %v4143_v8 = vmax.f32 %v4111_v41, 0.0 }
 0x4bd   : > { %v4146_v61 = vmax.f32 %v4114_v38, 0.0  ;;  %v4037_v43 = vadd.f32 %v5865_v53, %v7599_v49  ;;  %v4028_v23 = vpop.f32.mrb[157].mxu0 }
 0x4be   : > { %v4144_v26 = vmax.f32 %v4112_v44, 0.0  ;;  %v4029_v60 = vadd.f32 %v7599_v49, %v4028_v23  ;;  %v5866_v16 = vpop.f32.mrb[158].mxu0 }
 0x4bf   : > { %v4958_v5 = vpack.c.bf16 %v4146_v61, %v4145_v27  ;;  %v4085_v0 = vmax.f32 %v4037_v43, 0.0  ;;  %v4040_v42 = vadd.f32 %v5866_v16, %v7599_v49  ;;  %v4031_v34 = vpop.f32.mrb[159].mxu0 }
 0x4c0   : > { %v4953_v52 = vpack.c.bf16 %v4144_v26, %v4143_v8  ;;  %v4083_v2 = vmax.f32 %v4029_v60, 0.0  ;;  %v4032_v14 = vadd.f32 %v7599_v49, %v4031_v34 }
 0x4c1   : > { %4990 = vst [vmem:[%s6385_s20 + $0x58] sm:$0xff] %v4958_v5   ;;  %v4117_v1 = vadd.f32 %v4085_v0, %v3821_v30  ;;  %v4086_v21 = vmax.f32 %v4040_v42, 0.0 }
 0x4c2   : > { %4989 = vst [vmem:[%s6385_s20 + $0x50] sm:$0xff] %v4953_v52   ;;  %v4115_v24 = vadd.f32 %v4083_v2, %v3819_v18  ;;  %v4084_v46 = vmax.f32 %v4032_v14, 0.0 }
 0x4c3   : > { %v4118_v17 = vadd.f32 %v4086_v21, %v3822_v6  ;;  %v4149_v3 = vmax.f32 %v4117_v1, 0.0 }
 0x4c4   : > { %v4116_v12 = vadd.f32 %v4084_v46, %v3820_v29  ;;  %v5869_v45 = vpop.f32.mrb[160].mxu0  ;;  %v4147_v33 = vmax.f32 %v4115_v24, 0.0 }
 0x4c5   : > { %v4150_v7 = vmax.f32 %v4118_v17, 0.0  ;;  %v4053_v36 = vadd.f32 %v5869_v45, %v7599_v49  ;;  %v4044_v20 = vpop.f32.mrb[161].mxu0 }
 0x4c6   : > { %v4148_v59 = vmax.f32 %v4116_v12, 0.0  ;;  %v4045_v37 = vadd.f32 %v7599_v49, %v4044_v20  ;;  %v5870_v32 = vpop.f32.mrb[162].mxu0 }
 0x4c7   : > { %v4968_v55 = vpack.c.bf16 %v4150_v7, %v4149_v3  ;;  %v4089_v9 = vmax.f32 %v4053_v36, 0.0  ;;  %v4056_v57 = vadd.f32 %v5870_v32, %v7599_v49  ;;  %v4047_v50 = vpop.f32.mrb[163].mxu0 }
 0x4c8   : > { %v4963_v63 = vpack.c.bf16 %v4148_v59, %v4147_v33  ;;  %v4087_v25 = vmax.f32 %v4045_v37, 0.0  ;;  %v4048_v54 = vadd.f32 %v7599_v49, %v4047_v50 }
 0x4c9   : > { %4992 = vst [vmem:[%s6385_s20 + $0x68] sm:$0xff] %v4968_v55   ;;  %v4121_v51 = vadd.f32 %v4089_v9, %v3825_v35  ;;  %v4090_v15 = vmax.f32 %v4056_v57, 0.0 }
 0x4ca   : > { %4991 = vst [vmem:[%s6385_s20 + $0x60] sm:$0xff] %v4963_v63   ;;  %v4119_v11 = vadd.f32 %v4087_v25, %v3823_v48  ;;  %v4088_v10 = vmax.f32 %v4048_v54, 0.0 }
 0x4cb   : > { %v4122_v56 = vadd.f32 %v4090_v15, %v3826_v47  ;;  %v4153_v39 = vmax.f32 %v4121_v51, 0.0 }
 0x4cc   : > { %v4120_v41 = vadd.f32 %v4088_v10, %v3824_v13  ;;  %v4151_v38 = vmax.f32 %v4119_v11, 0.0 }
 0x4cd   : > { %v4154_v58 = vmax.f32 %v4122_v56, 0.0 }
 0x4ce   : > { %v4152_v28 = vmax.f32 %v4120_v41, 0.0 }
 0x4cf   : > { %v4978_v44 = vpack.c.bf16 %v4154_v58, %v4153_v39 }
 0x4d0   : > { %v4973_v53 = vpack.c.bf16 %v4152_v28, %v4151_v38 }
 0x4d1   : > { %4994 = vst [vmem:[%s6385_s20 + $0x78] sm:$0xff] %v4978_v44  }
 0x4d2   : > { %4993 = vst [vmem:[%s6385_s20 + $0x70] sm:$0xff] %v4973_v53  }
 0x4d3 PF: > { %s19_s11 = sadd.s32 1, %s6304_s11   ;;  %s7746_s30 = smov %s6300_s10 }
 0x4d4   : > { %p16_p9 = scmp.ge.s32.totalorder %s19_s11, 4   ;;  %s7747_s10 = smov %s7749_s12 }
 0x4d6   :  { %18 = sbr.rel (!%p16_p9) target bundleno = 2 (0x2), region = 188 }
 0x4dd   :  { %4347 = vsyncmov [#allocation3] }
 0x4e0   :  { %s4348_s16 = vpop.sfrf %4347 }
 0x4e1   :  { %p4860_p10 = scmp.ne.s32.totalorder %s4348_s16, 0 }
 0x4e3   :  { %4352 = shalt.err (%p4860_p10)  }
 0x4e4   :  { %4354 = vsyncmov [#allocation3 + $0x1] }
 0x4e7   :  { %s4355_s17 = vpop.sfrf %4354 }
 0x4e8   :  { %p4861_p11 = scmp.ne.s32.totalorder %s4355_s17, 0 }
 0x4ea   :  { %4359 = shalt.err (%p4861_p11)  }

</bundles_post_ra>
